<compile_context>
chip_gen: v5e
topology: v5e:2x2
jax: 0.10.0
libtpu: 0.0.40
codegen_flags: <defaults>
</compile_context>

<pallas_src>
import functools

import jax
import jax.numpy as jnp
from jax.experimental import pallas as pl
from jax.experimental.pallas import tpu as pltpu


def _round_up(a, b):
    return (a + b - 1) // b * b


def _layernorm(x, gamma, beta, eps=1e-5):
    # x: [tm, d_model] f32; gamma/beta: [1, d_model] f32
    mean = jnp.mean(x, axis=-1, keepdims=True)
    xc = x - mean
    var = jnp.mean(xc * xc, axis=-1, keepdims=True)
    inv = jax.lax.rsqrt(var + eps)   # rsqrt -> EUP slot, keeps work off the VALU
    return xc * inv * gamma + beta


# ---------------------------------------------------------------------------
# Kernel A: weight-resident (no reduction grid axis).  W1/W2 use a constant
# index_map so they are DMA'd from HBM once and stay resident in VMEM across
# all row tiles i.
# ---------------------------------------------------------------------------
def ffn_kernel_resident(x_ref, w1_ref, b1_ref, w2_ref, b2_ref, g_ref, beta_ref,
                        o_ref, *, pre_norm: bool, mm_dtype):
    gamma = g_ref[...].astype(jnp.float32)
    beta = beta_ref[...].astype(jnp.float32)

    if pre_norm:
        # Module: src = norm(src); src = src + linear2(relu(linear1(src)))
        xn = _layernorm(x_ref[...].astype(jnp.float32), gamma, beta)
        x_mm = xn.astype(mm_dtype)
    else:
        x_mm = x_ref[...].astype(mm_dtype)

    # bf16 (or native) operands on the MXU, f32 accumulation.
    h = jnp.dot(x_mm, w1_ref[...], preferred_element_type=jnp.float32)
    h = jnp.maximum(h + b1_ref[...].astype(jnp.float32), 0.0)
    y = jnp.dot(h.astype(mm_dtype), w2_ref[...], preferred_element_type=jnp.float32)
    y = y + b2_ref[...].astype(jnp.float32)

    if pre_norm:
        out = xn + y
    else:
        out = _layernorm(x_ref[...].astype(jnp.float32) + y, gamma, beta)
    o_ref[...] = out.astype(o_ref.dtype)


# ---------------------------------------------------------------------------
# Kernel B: ffn_dim reduction tiled on a second ("arbitrary") grid axis with an
# f32 VMEM accumulator.  Used only when the full weights don't fit VMEM.
# ---------------------------------------------------------------------------
def ffn_kernel_ktiled(x_ref, w1_ref, b1_ref, w2_ref, b2_ref, g_ref, beta_ref,
                      o_ref, acc_ref, xn_ref, *, pre_norm: bool, mm_dtype):
    k = pl.program_id(1)
    nk = pl.num_programs(1)

    if pre_norm:
        # LayerNorm hoisted out of the k loop: compute once, stash in VMEM scratch.
        @pl.when(k == 0)
        def _():
            gamma = g_ref[...].astype(jnp.float32)
            beta = beta_ref[...].astype(jnp.float32)
            xn_ref[...] = _layernorm(x_ref[...].astype(jnp.float32), gamma, beta)
        x_mm = xn_ref[...].astype(mm_dtype)
    else:
        x_mm = x_ref[...].astype(mm_dtype)

    # h_chunk = relu(x @ W1[:, k-chunk] + b1[k-chunk])       (MXU, f32 accumulation)
    h = jnp.dot(x_mm, w1_ref[...], preferred_element_type=jnp.float32)
    h = jnp.maximum(h + b1_ref[...].astype(jnp.float32), 0.0)
    # partial = h_chunk @ W2[k-chunk, :]   (bf16 operands, f32 result)
    part = jnp.dot(h.astype(mm_dtype), w2_ref[...], preferred_element_type=jnp.float32)

    @pl.when(k == 0)
    def _():
        acc_ref[...] = part          # write directly; no zero-init + add round trip

    @pl.when(k > 0)
    def _():
        acc_ref[...] += part

    @pl.when(k == nk - 1)
    def _():
        gamma = g_ref[...].astype(jnp.float32)
        beta = beta_ref[...].astype(jnp.float32)
        y = acc_ref[...] + b2_ref[...].astype(jnp.float32)
        if pre_norm:
            out = xn_ref[...] + y
        else:
            out = _layernorm(x_ref[...].astype(jnp.float32) + y, gamma, beta)
        o_ref[...] = out.astype(o_ref.dtype)


def _vmem_capacity_bytes():
    try:
        return int(pltpu.get_tpu_info().vmem_capacity_bytes)
    except Exception:
        return 64 * 1024 * 1024      # conservative: v7x per-core VMEM


def _pick_tk(ffn_dim, tile_k):
    """Largest multiple of 128 that divides ffn_dim and is <= tile_k."""
    if ffn_dim % 128 != 0:
        # Odd FFN dims: take the whole reduction dim (typical FFN dims are 128-mult).
        return ffn_dim
    tk = min(_round_up(tile_k, 128), ffn_dim)
    while ffn_dim % tk != 0:
        tk -= 128
    return tk


def ffn_forward(x, w1, b1, w2, b2, gamma, beta, *, pre_norm=False,
                tile_m=256, tile_k=512, use_bf16_mm=True, weight_resident=None):
    """x: [..., d_model]. Returns array of same shape/dtype."""
    orig_shape = x.shape
    d_model = orig_shape[-1]
    ffn_dim = w1.shape[1]
    assert w1.shape == (d_model, ffn_dim)
    assert w2.shape == (ffn_dim, d_model)

    # MXU operand dtype: bf16 where profitable (every generation's MXU is bf16-native).
    if use_bf16_mm and jnp.dtype(w1.dtype).itemsize > 2:
        mm_dtype = jnp.bfloat16
    else:
        mm_dtype = jnp.dtype(w1.dtype)
    w1_mm = w1.astype(mm_dtype)          # cast once in the wrapper: halves weight HBM bytes
    w2_mm = w2.astype(mm_dtype)

    x2d = x.reshape(-1, d_model)
    N = x2d.shape[0]

    # Sublane granularity: 16 rows for 2-byte dtypes (bf16), 8 for 4-byte (f32).
    sub = 16 if x.dtype.itemsize == 2 else 8
    tm = min(_round_up(tile_m, sub), _round_up(N, sub))
    n_pad = _round_up(N, tm)
    if n_pad != N:
        x2d = jnp.pad(x2d, ((0, n_pad - N), (0, 0)))

    # biases / LN params as 2-D rows so they map cleanly onto (sublane, lane).
    b1_2d = b1.reshape(1, ffn_dim)
    b2_2d = b2.reshape(1, d_model)
    g_2d = gamma.reshape(1, d_model)
    be_2d = beta.reshape(1, d_model)

    x_bytes = jnp.dtype(x.dtype).itemsize
    mm_bytes = jnp.dtype(mm_dtype).itemsize
    out_bytes = x_bytes
    vmem_cap = _vmem_capacity_bytes()

    # VMEM need for the weight-resident path (double-buffer budgeting).
    res_need = (2 * tm * d_model * (x_bytes + out_bytes)            # x / out tiles
                + 2 * (d_model * ffn_dim + ffn_dim * d_model) * mm_bytes  # W1 + W2
                + 2 * ffn_dim * 4 + 6 * d_model * 4                 # b1, b2, gamma, beta
                + tm * ffn_dim * (4 + mm_bytes)                     # h f32 + bf16 copy
                + 2 * tm * d_model * 4)                             # f32 temporaries
    if weight_resident is None:
        weight_resident = (int(res_need * 1.4) + (4 << 20)) <= int(vmem_cap * 0.6)

    if weight_resident:
        # TODO(synk): on v7x megacore, weights could live in VMEM_SHARED to avoid the
        # 2x one-time DMA across the two TensorCores; left as plain VMEM residency.
        vmem_limit = min(max(int(res_need * 1.5) + (8 << 20), 32 << 20),
                         vmem_cap - (8 << 20))
        kernel = functools.partial(ffn_kernel_resident, pre_norm=pre_norm,
                                   mm_dtype=mm_dtype)
        out = pl.pallas_call(
            kernel,
            out_shape=jax.ShapeDtypeStruct((n_pad, d_model), x.dtype),
            grid_spec=pltpu.PrefetchScalarGridSpec(
                num_scalar_prefetch=0,
                grid=(n_pad // tm,),
                in_specs=[
                    pl.BlockSpec((tm, d_model), lambda i: (i, 0)),        # x rows
                    pl.BlockSpec((d_model, ffn_dim), lambda i: (0, 0)),   # W1 (resident)
                    pl.BlockSpec((1, ffn_dim), lambda i: (0, 0)),         # b1
                    pl.BlockSpec((ffn_dim, d_model), lambda i: (0, 0)),   # W2 (resident)
                    pl.BlockSpec((1, d_model), lambda i: (0, 0)),         # b2
                    pl.BlockSpec((1, d_model), lambda i: (0, 0)),         # ln gamma
                    pl.BlockSpec((1, d_model), lambda i: (0, 0)),         # ln beta
                ],
                out_specs=pl.BlockSpec((tm, d_model), lambda i: (i, 0)),
            ),
            compiler_params=pltpu.CompilerParams(
                dimension_semantics=("parallel",),
                vmem_limit_bytes=vmem_limit,
            ),
        )(x2d, w1_mm, b1_2d, w2_mm, b2_2d, g_2d, be_2d)
    else:
        tk = _pick_tk(ffn_dim, tile_k)
        kt_need = (2 * tm * d_model * (x_bytes + out_bytes)
                   + 2 * (d_model * tk + tk * d_model) * mm_bytes    # W1/W2 slivers
                   + 2 * tk * 4 + 6 * d_model * 4
                   + tm * tk * (4 + mm_bytes)                        # h temporaries
                   + 2 * tm * d_model * 4)                           # acc + xn scratch
        vmem_limit = min(max(int(kt_need * 1.5) + (8 << 20), 32 << 20),
                         vmem_cap - (8 << 20))
        kernel = functools.partial(ffn_kernel_ktiled, pre_norm=pre_norm,
                                   mm_dtype=mm_dtype)
        out = pl.pallas_call(
            kernel,
            out_shape=jax.ShapeDtypeStruct((n_pad, d_model), x.dtype),
            grid_spec=pltpu.PrefetchScalarGridSpec(
                num_scalar_prefetch=0,
                grid=(n_pad // tm, ffn_dim // tk),
                in_specs=[
                    pl.BlockSpec((tm, d_model), lambda i, k: (i, 0)),   # x (resident over k)
                    pl.BlockSpec((d_model, tk), lambda i, k: (0, k)),   # W1 sliver
                    pl.BlockSpec((1, tk), lambda i, k: (0, k)),         # b1 sliver
                    pl.BlockSpec((tk, d_model), lambda i, k: (k, 0)),   # W2 sliver
                    pl.BlockSpec((1, d_model), lambda i, k: (0, 0)),    # b2
                    pl.BlockSpec((1, d_model), lambda i, k: (0, 0)),    # ln gamma
                    pl.BlockSpec((1, d_model), lambda i, k: (0, 0)),    # ln beta
                ],
                out_specs=pl.BlockSpec((tm, d_model), lambda i, k: (i, 0)),
                scratch_shapes=[pltpu.VMEM((tm, d_model), jnp.float32),   # accumulator
                                pltpu.VMEM((tm, d_model), jnp.float32)],  # hoisted norm(x)
            ),
            compiler_params=pltpu.CompilerParams(
                dimension_semantics=("parallel", "arbitrary"),
                vmem_limit_bytes=vmem_limit,
            ),
        )(x2d, w1_mm, b1_2d, w2_mm, b2_2d, g_2d, be_2d)

    if n_pad != N:
        out = out[:N]
    return out.reshape(orig_shape)


def _reference(x, w1, b1, w2, b2, gamma, beta, pre_norm=False, eps=1e-5):
    def ln(v):
        m = jnp.mean(v, axis=-1, keepdims=True)
        var = jnp.mean((v - m) ** 2, axis=-1, keepdims=True)
        return (v - m) / jnp.sqrt(var + eps) * gamma + beta
    if pre_norm:
        xn = ln(x)
        y = jnp.maximum(xn @ w1 + b1, 0.0) @ w2 + b2
        return xn + y
    else:
        y = jnp.maximum(x @ w1 + b1, 0.0) @ w2 + b2
        return ln(x + y)


if __name__ == "__main__":
    # Module defaults: d_model=256, ffn_dim=1024, act='relu', dropout=0.0.
    batch, seq, d_model, ffn_dim = 2, 8, 256, 1024

    key = jax.random.PRNGKey(0)
    kx, k1, k2, k3, k4 = jax.random.split(key, 5)

    x = jax.random.normal(kx, (batch, seq, d_model), dtype=jnp.float32)

    # Deterministic parameter init (uniform, roughly matching nn.Linear scaling).
    lim1 = 1.0 / (d_model ** 0.5)
    lim2 = 1.0 / (ffn_dim ** 0.5)
    w1 = jax.random.uniform(k1, (d_model, ffn_dim), jnp.float32, -lim1, lim1)
    b1 = jax.random.uniform(k2, (ffn_dim,), jnp.float32, -lim1, lim1)
    w2 = jax.random.uniform(k3, (ffn_dim, d_model), jnp.float32, -lim2, lim2)
    b2 = jax.random.uniform(k4, (d_model,), jnp.float32, -lim2, lim2)
    gamma = jnp.ones((d_model,), jnp.float32)
    beta = jnp.zeros((d_model,), jnp.float32)

    for pre_norm in (False, True):
        ref = _reference(x, w1, b1, w2, b2, gamma, beta, pre_norm=pre_norm)

        # bf16-MXU fast path: weight-resident and k-tiled variants.
        for resident in (True, False):
            out = ffn_forward(x, w1, b1, w2, b2, gamma, beta, pre_norm=pre_norm,
                              use_bf16_mm=True, weight_resident=resident)
            out = jax.block_until_ready(out)
            assert out.shape == x.shape and out.dtype == x.dtype
            assert jnp.allclose(out, ref, atol=2e-2, rtol=2e-2), \
                f"bf16-MXU mismatch vs reference (pre_norm={pre_norm}, resident={resident})"

        # f32-MXU structural check against the f32 reference at tight tolerance.
        out = ffn_forward(x, w1, b1, w2, b2, gamma, beta, pre_norm=pre_norm,
                          use_bf16_mm=False)
        out = jax.block_until_ready(out)
        assert jnp.allclose(out, ref, atol=5e-4, rtol=5e-4), \
            f"f32-MXU mismatch vs reference (pre_norm={pre_norm})"

    print("KERNEL_OK")
</pallas_src>

<mosaic_0001>
module attributes {stable_mosaic.version = 11 : i64} {
  func.func @ffn_kernel_resident(%arg0: i32, %arg1: memref<16x256xf32, #tpu.memory_space<vmem>>, %arg2: memref<256x1024xbf16, #tpu.memory_space<vmem>>, %arg3: memref<1x1024xf32, #tpu.memory_space<vmem>>, %arg4: memref<1024x256xbf16, #tpu.memory_space<vmem>>, %arg5: memref<1x256xf32, #tpu.memory_space<vmem>>, %arg6: memref<1x256xf32, #tpu.memory_space<vmem>>, %arg7: memref<1x256xf32, #tpu.memory_space<vmem>>, %arg8: memref<16x256xf32, #tpu.memory_space<vmem>>) attributes {dimension_semantics = [#tpu.dimension_semantics<parallel>], iteration_bounds = array<i64: 1>, scalar_prefetch = 0 : i64, scratch_operands = 0 : i64, tpu.core_type = #tpu.core_type<tc>, window_params = [{transform_indices = @transform_0, window_bounds = array<i64: 16, 256>}, {pipeline_mode = #tpu.pipeline_mode<synchronous>, transform_indices = @transform_1, window_bounds = array<i64: 256, 1024>}, {pipeline_mode = #tpu.pipeline_mode<synchronous>, transform_indices = @transform_2, window_bounds = array<i64: 1, 1024>}, {pipeline_mode = #tpu.pipeline_mode<synchronous>, transform_indices = @transform_3, window_bounds = array<i64: 1024, 256>}, {pipeline_mode = #tpu.pipeline_mode<synchronous>, transform_indices = @transform_4, window_bounds = array<i64: 1, 256>}, {pipeline_mode = #tpu.pipeline_mode<synchronous>, transform_indices = @transform_5, window_bounds = array<i64: 1, 256>}, {pipeline_mode = #tpu.pipeline_mode<synchronous>, transform_indices = @transform_6, window_bounds = array<i64: 1, 256>}, {transform_indices = @transform_7, window_bounds = array<i64: 16, 256>}]} {
    %c0 = arith.constant 0 : index
    %c0_0 = arith.constant 0 : index
    %0 = vector.load %arg6[%c0, %c0_0] : memref<1x256xf32, #tpu.memory_space<vmem>>, vector<1x256xf32>
    %c0_1 = arith.constant 0 : index
    %c0_2 = arith.constant 0 : index
    %1 = vector.load %arg7[%c0_1, %c0_2] : memref<1x256xf32, #tpu.memory_space<vmem>>, vector<1x256xf32>
    %c0_3 = arith.constant 0 : index
    %c0_4 = arith.constant 0 : index
    %2 = vector.load %arg1[%c0_3, %c0_4] : memref<16x256xf32, #tpu.memory_space<vmem>>, vector<16x256xf32>
    %3 = arith.truncf %2 : vector<16x256xf32> to vector<16x256xbf16>
    %c0_5 = arith.constant 0 : index
    %c0_6 = arith.constant 0 : index
    %4 = vector.load %arg2[%c0_5, %c0_6] : memref<256x1024xbf16, #tpu.memory_space<vmem>>, vector<256x1024xbf16>
    %cst = arith.constant dense<0.000000e+00> : vector<16x1024xf32>
    %5 = tpu.matmul %3, %4, %cst {dimension_numbers = #tpu.dot_dimension_numbers<[1], [0], [0], [1], [0, 0, 1, 1], [], []>} : vector<16x256xbf16>, vector<256x1024xbf16>, vector<16x1024xf32> -> vector<16x1024xf32>
    %c0_7 = arith.constant 0 : index
    %c0_8 = arith.constant 0 : index
    %6 = vector.load %arg3[%c0_7, %c0_8] : memref<1x1024xf32, #tpu.memory_space<vmem>>, vector<1x1024xf32>
    %7 = vector.broadcast %6 : vector<1x1024xf32> to vector<16x1024xf32>
    %8 = arith.addf %5, %7 : vector<16x1024xf32>
    %cst_9 = arith.constant 0.000000e+00 : f32
    %9 = vector.broadcast %cst_9 : f32 to vector<16x1024xf32>
    %10 = arith.maximumf %8, %9 : vector<16x1024xf32>
    %11 = arith.truncf %10 : vector<16x1024xf32> to vector<16x1024xbf16>
    %c0_10 = arith.constant 0 : index
    %c0_11 = arith.constant 0 : index
    %12 = vector.load %arg4[%c0_10, %c0_11] : memref<1024x256xbf16, #tpu.memory_space<vmem>>, vector<1024x256xbf16>
    %cst_12 = arith.constant dense<0.000000e+00> : vector<16x256xf32>
    %13 = tpu.matmul %11, %12, %cst_12 {dimension_numbers = #tpu.dot_dimension_numbers<[1], [0], [0], [1], [0, 0, 1, 1], [], []>} : vector<16x1024xbf16>, vector<1024x256xbf16>, vector<16x256xf32> -> vector<16x256xf32>
    %c0_13 = arith.constant 0 : index
    %c0_14 = arith.constant 0 : index
    %14 = vector.load %arg5[%c0_13, %c0_14] : memref<1x256xf32, #tpu.memory_space<vmem>>, vector<1x256xf32>
    %15 = vector.broadcast %14 : vector<1x256xf32> to vector<16x256xf32>
    %16 = arith.addf %13, %15 : vector<16x256xf32>
    %c0_15 = arith.constant 0 : index
    %c0_16 = arith.constant 0 : index
    %17 = vector.load %arg1[%c0_15, %c0_16] : memref<16x256xf32, #tpu.memory_space<vmem>>, vector<16x256xf32>
    %18 = arith.addf %17, %16 : vector<16x256xf32>
    %cst_17 = arith.constant dense<0.000000e+00> : vector<16xf32>
    %19 = vector.multi_reduction <add>, %18, %cst_17 [1] : vector<16x256xf32> to vector<16xf32>
    %20 = vector.shape_cast %19 : vector<16xf32> to vector<16x1xf32>
    %cst_18 = arith.constant 2.560000e+02 : f32
    %21 = vector.broadcast %cst_18 : f32 to vector<16x1xf32>
    %22 = arith.divf %20, %21 : vector<16x1xf32>
    %23 = vector.broadcast %22 : vector<16x1xf32> to vector<16x256xf32>
    %24 = arith.subf %18, %23 : vector<16x256xf32>
    %25 = arith.mulf %24, %24 : vector<16x256xf32>
    %cst_19 = arith.constant dense<0.000000e+00> : vector<16xf32>
    %26 = vector.multi_reduction <add>, %25, %cst_19 [1] : vector<16x256xf32> to vector<16xf32>
    %27 = vector.shape_cast %26 : vector<16xf32> to vector<16x1xf32>
    %cst_20 = arith.constant 2.560000e+02 : f32
    %28 = vector.broadcast %cst_20 : f32 to vector<16x1xf32>
    %29 = arith.divf %27, %28 : vector<16x1xf32>
    %cst_21 = arith.constant 9.99999974E-6 : f32
    %30 = vector.broadcast %cst_21 : f32 to vector<16x1xf32>
    %31 = arith.addf %29, %30 : vector<16x1xf32>
    %32 = math.rsqrt %31 : vector<16x1xf32>
    %33 = vector.broadcast %32 : vector<16x1xf32> to vector<16x256xf32>
    %34 = arith.mulf %24, %33 : vector<16x256xf32>
    %35 = vector.broadcast %0 : vector<1x256xf32> to vector<16x256xf32>
    %36 = arith.mulf %34, %35 : vector<16x256xf32>
    %37 = vector.broadcast %1 : vector<1x256xf32> to vector<16x256xf32>
    %38 = arith.addf %36, %37 : vector<16x256xf32>
    %c0_22 = arith.constant 0 : index
    %c0_23 = arith.constant 0 : index
    %39 = vector.load %arg8[%c0_22, %c0_23] : memref<16x256xf32, #tpu.memory_space<vmem>>, vector<16x256xf32>
    tpu.vector_store %arg8[%c0_22, %c0_23], %38 {strides = array<i32>} : memref<16x256xf32, #tpu.memory_space<vmem>>, vector<16x256xf32>,
    return
  }
  func.func @transform_0(%arg0: i32) -> (i32, i32) {
    %c0_i32 = arith.constant 0 : i32
    %c0_i32_0 = arith.constant 0 : i32
    return %arg0, %c0_i32 : i32, i32
  }
  func.func @transform_1(%arg0: i32) -> (i32, i32) {
    %c0_i32 = arith.constant 0 : i32
    %c0_i32_0 = arith.constant 0 : i32
    %c0_i32_1 = arith.constant 0 : i32
    return %c0_i32, %c0_i32_0 : i32, i32
  }
  func.func @transform_2(%arg0: i32) -> (i32, i32) {
    %c0_i32 = arith.constant 0 : i32
    %c0_i32_0 = arith.constant 0 : i32
    %c0_i32_1 = arith.constant 0 : i32
    return %c0_i32, %c0_i32_0 : i32, i32
  }
  func.func @transform_3(%arg0: i32) -> (i32, i32) {
    %c0_i32 = arith.constant 0 : i32
    %c0_i32_0 = arith.constant 0 : i32
    %c0_i32_1 = arith.constant 0 : i32
    return %c0_i32, %c0_i32_0 : i32, i32
  }
  func.func @transform_4(%arg0: i32) -> (i32, i32) {
    %c0_i32 = arith.constant 0 : i32
    %c0_i32_0 = arith.constant 0 : i32
    %c0_i32_1 = arith.constant 0 : i32
    return %c0_i32, %c0_i32_0 : i32, i32
  }
  func.func @transform_5(%arg0: i32) -> (i32, i32) {
    %c0_i32 = arith.constant 0 : i32
    %c0_i32_0 = arith.constant 0 : i32
    %c0_i32_1 = arith.constant 0 : i32
    return %c0_i32, %c0_i32_0 : i32, i32
  }
  func.func @transform_6(%arg0: i32) -> (i32, i32) {
    %c0_i32 = arith.constant 0 : i32
    %c0_i32_0 = arith.constant 0 : i32
    %c0_i32_1 = arith.constant 0 : i32
    return %c0_i32, %c0_i32_0 : i32, i32
  }
  func.func @transform_7(%arg0: i32) -> (i32, i32) {
    %c0_i32 = arith.constant 0 : i32
    %c0_i32_0 = arith.constant 0 : i32
    return %arg0, %c0_i32 : i32, i32
  }
}

</mosaic_0001>

<bundles_post_ra>
// kernel: tpu_custom_call.1
= control target key start
LH: loop header
LB: loop body
LE: loop exit
PB: predicated region body
PF: predicated region fallthrough
CT: control target
= control target key end

     0   :  { %12 = vsyncpa [#allocation3], 0  ;;  %s3845_s0 = inlined_call_operand.hbm [shape: f32[16,256], index: 0, kind: input, shape index: {}]   ;;  %s3846_s1 = inlined_call_operand.hbm [shape: bf16[256,1024], index: 1, kind: input, shape index: {}]   ;;  %s3847_s2 = inlined_call_operand.hbm [shape: f32[1,1024], index: 2, kind: input, shape index: {}]   ;;  %s3848_s3 = inlined_call_operand.hbm [shape: bf16[1024,256], index: 3, kind: input, shape index: {}]   ;;  %s3849_s4 = inlined_call_operand.vmem [shape: f32[1,256], index: 4, kind: input, shape index: {}]   ;;  %s3850_s5 = inlined_call_operand.vmem [shape: f32[1,256], index: 5, kind: input, shape index: {}]   ;;  %s3851_s6 = inlined_call_operand.hbm [shape: f32[1,256], index: 6, kind: input, shape index: {}]   ;;  %s3852_s7 = inlined_call_operand.hbm [shape: f32[16,256], index: 7, kind: output, shape index: {}]  }
   0x1   :  { %13 = vsyncpa [#allocation6], 0 }
   0x2   :  { %14 = vsyncpa [#allocation9], 0  ;;  %s33_s26 = sshll.u32 %s3846_s1, 4  ;;  %s34_s26 = int_to_ptr.hbm [resolvable:$true] %s33_s26 }
   0x3   :  { %15 = vsyncpa [#allocation4], 0  ;;  %s3700_s27 = smov [#allocation5]   ;;  %s57_s8 = sshll.u32 %s3848_s3, 4  ;;  %s58_s8 = int_to_ptr.hbm [resolvable:$true] %s57_s8 }
   0x4   :  { %s35_s28 = sshll.u32 %s3700_s27, 4  ;;  %s3701_s9 = smov 512   ;;  %s36_s28 = int_to_ptr.vmem [resolvable:$true] %s35_s28 }
   0x5   :  { %s3702_s10 = smov 32   ;;  %s3703_s11 = smov [#allocation8]  }
   0x6   :  { %41 = dma.hbm_to_vmem [thread:$0]  %s34_s26, 16384, %s36_s28, [#allocation6], %s3701_s9, %s3701_s9, %s3702_s10  }
   0x7   :  { %s59_s12 = sshll.u32 %s3703_s11, 4  ;;  %s3704_s13 = smov 128   ;;  %s60_s12 = int_to_ptr.vmem [resolvable:$true] %s59_s12 }
   0x8   :  { %s3705_s14 = smov 8   ;;  %s20_s16 = sshll.u32 %s3845_s0, 4  ;;  %s21_s16 = int_to_ptr.hbm [resolvable:$true] %s20_s16 }
   0x9   :  { %65 = dma.hbm_to_vmem [thread:$0]  %s58_s8, 16384, %s60_s12, [#allocation9], %s3704_s13, %s3704_s13, %s3705_s14  }
   0xa   :  { %s3706_s17 = smov [#allocation2]   ;;  %s47_s20 = sshll.u32 %s3847_s2, 4  ;;  %s48_s20 = int_to_ptr.hbm [resolvable:$true] %s47_s20 }
   0xb   :  { %s22_s18 = sshll.u32 %s3706_s17, 4  ;;  %s3707_s21 = smov 256   ;;  %s23_s18 = int_to_ptr.vmem [resolvable:$true] %s22_s18 }
   0xc   :  { %s3708_s22 = smov 16   ;;  %s3709_s23 = smov [#allocation7]  }
   0xd   :  { %28 = dma.hbm_to_vmem [thread:$0]  %s21_s16, 512, %s23_s18, [#allocation3], %s3707_s21, %s3707_s21, %s3708_s22  }
   0xe   :  { %s49_s24 = sshll.u32 %s3709_s23, 4  ;;  %s75_s0 = sshll.u32 %s3851_s6, 4  ;;  %s50_s24 = int_to_ptr.vmem [resolvable:$true] %s49_s24  ;;  %s76_s0 = int_to_ptr.hbm [resolvable:$true] %s75_s0 }
   0xf   :  { %52 = dma.hbm_to_vmem [thread:$0]  %s48_s20, 128, %s50_s24, [#allocation6]  }
  0x10   :  { %s3710_s27 = smov [#allocation10]  }
  0x11   :  { %s77_s28 = sshll.u32 %s3710_s27, 4  ;;  %s78_s28 = int_to_ptr.vmem [resolvable:$true] %s77_s28 }
  0x12   :  { %80 = dma.hbm_to_vmem [thread:$0]  %s76_s0, 32, %s78_s28, [#allocation9]  }
  0x13   :  { %3692 = dma.done.wait [#allocation3], 512  }
  0x14   :  { %3693 = vsyncadd [#allocation3], 4294966784 }
  0x15   :  { %3694 = dma.done.wait [#allocation6], 16512  }
  0x16   :  { %3695 = vsyncadd [#allocation6], 4294950784 }
  0x17   :  { %3696 = dma.done.wait [#allocation9], 16416  }
  0x18   :  { %3697 = vsyncadd [#allocation9], 4294950880  ;;  %v2471_v0 = vld [vmem:[#allocation5 + $0x1c0] sm:$0xf]  ;;  %v3325_v5 = vld [vmem:[#allocation5 + $0x1c4] sm:$0xf] }
  0x19   :  { %v3329_v1 = vld [vmem:[#allocation5 + $0x1dc] sm:$0xf0]  ;;  %v2473_v6 = vld [vmem:[#allocation5 + $0x1e0] sm:$0xf0]  ;;  %s2230_s10 = sshll.u32 %s3852_s7, 4  ;;  %s2231_s10 = int_to_ptr.hbm [resolvable:$true] %s2230_s10 }
  0x1a   :  { %v2727_v2 = vld [vmem:[#allocation5 + $0x3c0] sm:$0xf]  ;;  %v2472_v3 = vor.u32 %v3329_v1, %v2471_v0  ;;  %v2476_v8 = vor.u32 %v3325_v5, %v2473_v6  ;;  %v3389_v9 = vld [vmem:[#allocation5 + $0x3c4] sm:$0xf] }
  0x1b   :  { %v3393_v4 = vld [vmem:[#allocation5 + $0x3dc] sm:$0xf0]  ;;  %v2729_v10 = vld [vmem:[#allocation5 + $0x3e0] sm:$0xf0] }
  0x1c   :  { %v2728_v7 = vor.u32 %v3393_v4, %v2727_v2  ;;  %v2439_v11 = vld [vmem:[#allocation5 + $0x180] sm:$0xf]  ;;  %895 = vmatpush.bf16.msra.mxu0 %v2472_v3  ;;  %v2732_v12 = vor.u32 %v3389_v9, %v2729_v10  ;;  %923 = vmatpush.bf16.msra.mxu2 %v2476_v8  ;;  %v3317_v18 = vld [vmem:[#allocation5 + $0x184] sm:$0xf] }
  0x1d   :  { %v3321_v13 = vld [vmem:[#allocation5 + $0x19c] sm:$0xf0]  ;;  %v2441_v19 = vld [vmem:[#allocation5 + $0x1a0] sm:$0xf0] }
  0x1e   :  { %v2695_v14 = vld [vmem:[#allocation5 + $0x380] sm:$0xf]  ;;  %909 = vmatpush.bf16.msra.mxu1 %v2728_v7  ;;  %v2440_v16 = vor.u32 %v3321_v13, %v2439_v11  ;;  %v3381_v20 = vld [vmem:[#allocation5 + $0x384] sm:$0xf]  ;;  %937 = vmatpush.bf16.msra.mxu3 %v2732_v12  ;;  %v2444_v21 = vor.u32 %v3317_v18, %v2441_v19 }
  0x1f   :  { %v3385_v15 = vld [vmem:[#allocation5 + $0x39c] sm:$0xf0]  ;;  %v2697_v22 = vld [vmem:[#allocation5 + $0x3a0] sm:$0xf0] }
  0x20   :  { %v2696_v17 = vor.u32 %v3385_v15, %v2695_v14  ;;  %v2407_v23 = vld [vmem:[#allocation5 + $0x140] sm:$0xf]  ;;  %v2700_v25 = vor.u32 %v3381_v20, %v2697_v22  ;;  %v3309_v28 = vld [vmem:[#allocation5 + $0x144] sm:$0xf]  ;;  %896 = vmatpush.bf16.msra.mxu0 %v2440_v16  ;;  %924 = vmatpush.bf16.msra.mxu2 %v2444_v21 }
  0x21   :  { %v3313_v24 = vld [vmem:[#allocation5 + $0x15c] sm:$0xf0]  ;;  %v2409_v30 = vld [vmem:[#allocation5 + $0x160] sm:$0xf0] }
  0x22   :  { %v2663_v26 = vld [vmem:[#allocation5 + $0x340] sm:$0xf]  ;;  %v2408_v29 = vor.u32 %v3313_v24, %v2407_v23  ;;  %v3373_v31 = vld [vmem:[#allocation5 + $0x344] sm:$0xf]  ;;  %910 = vmatpush.bf16.msra.mxu1 %v2696_v17  ;;  %v2412_v34 = vor.u32 %v3309_v28, %v2409_v30  ;;  %938 = vmatpush.bf16.msra.mxu3 %v2700_v25  ;;  %v2479_v28 = vld [vmem:[#allocation5 + $0x1c8] sm:$0xf] }
  0x23   :  { %v3377_v27 = vld [vmem:[#allocation5 + $0x35c] sm:$0xf0]  ;;  %v2665_v32 = vld [vmem:[#allocation5 + $0x360] sm:$0xf0]  ;;  %v2735_v30 = vld [vmem:[#allocation5 + $0x3c8] sm:$0xf] }
  0x24   :  { %v2664_v33 = vor.u32 %v3377_v27, %v2663_v26  ;;  %v2375_v35 = vld [vmem:[#allocation5 + $0x100] sm:$0xf]  ;;  %v2668_v38 = vor.u32 %v3373_v31, %v2665_v32  ;;  %v3301_v40 = vld [vmem:[#allocation5 + $0x104] sm:$0xf]  ;;  %897 = vmatpush.bf16.msra.mxu0 %v2408_v29  ;;  %925 = vmatpush.bf16.msra.mxu2 %v2412_v34  ;;  %v3330_v29 = vld [vmem:[#allocation5 + $0x1e4] sm:$0xf0] }
  0x25   :  { %v3305_v36 = vld [vmem:[#allocation5 + $0x11c] sm:$0xf0]  ;;  %v2377_v41 = vld [vmem:[#allocation5 + $0x120] sm:$0xf0]  ;;  %v3394_v32 = vld [vmem:[#allocation5 + $0x3e4] sm:$0xf0] }
  0x26   :  { %v2631_v37 = vld [vmem:[#allocation5 + $0x300] sm:$0xf]  ;;  %v3365_v42 = vld [vmem:[#allocation5 + $0x304] sm:$0xf]  ;;  %v2376_v44 = vor.u32 %v3305_v36, %v2375_v35  ;;  %911 = vmatpush.bf16.msra.mxu1 %v2664_v33  ;;  %v2380_v46 = vor.u32 %v3301_v40, %v2377_v41  ;;  %939 = vmatpush.bf16.msra.mxu3 %v2668_v38  ;;  %v3326_v33 = vld [vmem:[#allocation5 + $0x1cc] sm:$0xf]  ;;  %v2480_v40 = vor.u32 %v3330_v29, %v2479_v28 }
  0x27   :  { %v3369_v39 = vld [vmem:[#allocation5 + $0x31c] sm:$0xf0]  ;;  %v2633_v43 = vld [vmem:[#allocation5 + $0x320] sm:$0xf0]  ;;  %v2481_v34 = vld [vmem:[#allocation5 + $0x1e8] sm:$0xf0] }
  0x28   :  { %v2632_v45 = vor.u32 %v3369_v39, %v2631_v37  ;;  %v2343_v47 = vld [vmem:[#allocation5 + $0xc0] sm:$0xf]  ;;  %v2636_v50 = vor.u32 %v3365_v42, %v2633_v43  ;;  %v3293_v52 = vld [vmem:[#allocation5 + $0xc4] sm:$0xf]  ;;  %898 = vmatpush.bf16.msra.mxu0 %v2376_v44  ;;  %926 = vmatpush.bf16.msra.mxu2 %v2380_v46  ;;  %v3390_v37 = vld [vmem:[#allocation5 + $0x3cc] sm:$0xf]  ;;  %v2736_v43 = vor.u32 %v3394_v32, %v2735_v30 }
  0x29   :  { %v3297_v48 = vld [vmem:[#allocation5 + $0xdc] sm:$0xf0]  ;;  %v2345_v53 = vld [vmem:[#allocation5 + $0xe0] sm:$0xf0]  ;;  %v2737_v38 = vld [vmem:[#allocation5 + $0x3e8] sm:$0xf0]  ;;  %v2484_v44 = vor.u32 %v3326_v33, %v2481_v34 }
  0x2a   :  { %v2599_v49 = vld [vmem:[#allocation5 + $0x2c0] sm:$0xf]  ;;  %v3357_v54 = vld [vmem:[#allocation5 + $0x2c4] sm:$0xf]  ;;  %v2344_v56 = vor.u32 %v3297_v48, %v2343_v47  ;;  %912 = vmatpush.bf16.msra.mxu1 %v2632_v45  ;;  %v2348_v58 = vor.u32 %v3293_v52, %v2345_v53  ;;  %940 = vmatpush.bf16.msra.mxu3 %v2636_v50  ;;  %v2447_v41 = vld [vmem:[#allocation5 + $0x188] sm:$0xf]  ;;  %v2740_v48 = vor.u32 %v3390_v37, %v2737_v38 }
  0x2b   :  { %v3361_v51 = vld [vmem:[#allocation5 + $0x2dc] sm:$0xf0]  ;;  %v2601_v55 = vld [vmem:[#allocation5 + $0x2e0] sm:$0xf0]  ;;  %v3322_v42 = vld [vmem:[#allocation5 + $0x1a4] sm:$0xf0] }
  0x2c   :  { %v2600_v57 = vor.u32 %v3361_v51, %v2599_v49  ;;  %v2311_v59 = vld [vmem:[#allocation5 + $0x80] sm:$0xf]  ;;  %v2604_v62 = vor.u32 %v3357_v54, %v2601_v55  ;;  %v3285_v0 = vld [vmem:[#allocation5 + $0x84] sm:$0xf]  ;;  %899 = vmatpush.bf16.msra.mxu0 %v2344_v56  ;;  %927 = vmatpush.bf16.msra.mxu2 %v2348_v58  ;;  %v2703_v45 = vld [vmem:[#allocation5 + $0x388] sm:$0xf]  ;;  %v2448_v55 = vor.u32 %v3322_v42, %v2447_v41 }
  0x2d   :  { %v3289_v60 = vld [vmem:[#allocation5 + $0x9c] sm:$0xf0]  ;;  %v2313_v1 = vld [vmem:[#allocation5 + $0xa0] sm:$0xf0]  ;;  %v3386_v46 = vld [vmem:[#allocation5 + $0x3a4] sm:$0xf0] }
  0x2e   :  { %v2567_v61 = vld [vmem:[#allocation5 + $0x280] sm:$0xf]  ;;  %v3349_v2 = vld [vmem:[#allocation5 + $0x284] sm:$0xf]  ;;  %v2312_v4 = vor.u32 %v3289_v60, %v2311_v59  ;;  %913 = vmatpush.bf16.msra.mxu1 %v2600_v57  ;;  %v2316_v6 = vor.u32 %v3285_v0, %v2313_v1  ;;  %941 = vmatpush.bf16.msra.mxu3 %v2604_v62  ;;  %v3318_v47 = vld [vmem:[#allocation5 + $0x18c] sm:$0xf]  ;;  %v2704_v58 = vor.u32 %v3386_v46, %v2703_v45 }
  0x2f   :  { %v3353_v63 = vld [vmem:[#allocation5 + $0x29c] sm:$0xf0]  ;;  %v2569_v3 = vld [vmem:[#allocation5 + $0x2a0] sm:$0xf0]  ;;  %v2449_v49 = vld [vmem:[#allocation5 + $0x1a8] sm:$0xf0] }
  0x30   :  { %v2568_v5 = vor.u32 %v3353_v63, %v2567_v61  ;;  %v2279_v7 = vld [vmem:[#allocation5 + $0x40] sm:$0xf]  ;;  %v2572_v10 = vor.u32 %v3349_v2, %v2569_v3  ;;  %v3277_v12 = vld [vmem:[#allocation5 + $0x44] sm:$0xf]  ;;  %900 = vmatpush.bf16.msra.mxu0 %v2312_v4  ;;  %928 = vmatpush.bf16.msra.mxu2 %v2316_v6  ;;  %v3382_v50 = vld [vmem:[#allocation5 + $0x38c] sm:$0xf]  ;;  %v2452_v59 = vor.u32 %v3318_v47, %v2449_v49 }
  0x31   :  { %v3281_v8 = vld [vmem:[#allocation5 + $0x5c] sm:$0xf0]  ;;  %v2281_v13 = vld [vmem:[#allocation5 + $0x60] sm:$0xf0]  ;;  %v2705_v51 = vld [vmem:[#allocation5 + $0x3a8] sm:$0xf0] }
  0x32   :  { %v2535_v9 = vld [vmem:[#allocation5 + $0x240] sm:$0xf]  ;;  %v3341_v14 = vld [vmem:[#allocation5 + $0x244] sm:$0xf]  ;;  %v2280_v16 = vor.u32 %v3281_v8, %v2279_v7  ;;  %914 = vmatpush.bf16.msra.mxu1 %v2568_v5  ;;  %v2284_v20 = vor.u32 %v3277_v12, %v2281_v13  ;;  %942 = vmatpush.bf16.msra.mxu3 %v2572_v10  ;;  %v105_v53 = vld [vmem:[#allocation2 + $0x10] sm:$0xff]  ;;  %v2708_v0 = vor.u32 %v3382_v50, %v2705_v51 }
  0x33   :  { %v3345_v11 = vld [vmem:[#allocation5 + $0x25c] sm:$0xf0]  ;;  %v2537_v15 = vld [vmem:[#allocation5 + $0x260] sm:$0xf0]  ;;  %v104_v54 = vld [vmem:[#allocation2 + $0x8] sm:$0xff] }
  0x34   :  { %v2247_v17 = vld [vmem:[#allocation5] sm:$0xf]  ;;  %v2536_v19 = vor.u32 %v3345_v11, %v2535_v9  ;;  %v3269_v23 = vld [vmem:[#allocation5 + $0x4] sm:$0xf]  ;;  %v2540_v24 = vor.u32 %v3341_v14, %v2537_v15  ;;  %901 = vmatpush.bf16.msra.mxu0 %v2280_v16  ;;  %929 = vmatpush.bf16.msra.mxu2 %v2284_v20  ;;  %v106_v57 = vld [vmem:[#allocation2 + $0x18] sm:$0xff] }
  0x35   :  { %v3273_v18 = vld [vmem:[#allocation5 + $0x1c] sm:$0xf0]  ;;  %v2249_v25 = vld [vmem:[#allocation5 + $0x20] sm:$0xf0]  ;;  %v2415_v60 = vld [vmem:[#allocation5 + $0x148] sm:$0xf]  ;;  %v3773_v63 = vpack.c.bf16 %v106_v57, %v104_v54 }
  0x36   :  { %v2503_v21 = vld [vmem:[#allocation5 + $0x200] sm:$0xf]  ;;  %v3333_v26 = vld [vmem:[#allocation5 + $0x204] sm:$0xf]  ;;  %v2248_v31 = vor.u32 %v3273_v18, %v2247_v17  ;;  %915 = vmatpush.bf16.msra.mxu1 %v2536_v19  ;;  %v2252_v36 = vor.u32 %v3269_v23, %v2249_v25  ;;  %943 = vmatpush.bf16.msra.mxu3 %v2540_v24  ;;  %v3314_v61 = vld [vmem:[#allocation5 + $0x164] sm:$0xf0] }
  0x37   :  { %v3337_v22 = vld [vmem:[#allocation5 + $0x21c] sm:$0xf0]  ;;  %v2505_v27 = vld [vmem:[#allocation5 + $0x220] sm:$0xf0]  ;;  %v2671_v62 = vld [vmem:[#allocation5 + $0x348] sm:$0xf]  ;;  %v2416_v6 = vor.u32 %v3314_v61, %v2415_v60 }
  0x38   :  { %v2504_v35 = vor.u32 %v3337_v22, %v2503_v21  ;;  %v2508_v39 = vor.u32 %v3333_v26, %v2505_v27  ;;  %902 = vmatpush.bf16.msra.mxu0 %v2248_v31  ;;  %930 = vmatpush.bf16.msra.mxu2 %v2252_v36  ;;  %v103_v52 = vld [vmem:[#allocation2] sm:$0xff]  ;;  %v3378_v1 = vld [vmem:[#allocation5 + $0x364] sm:$0xf0]  ;;  %v3310_v2 = vld [vmem:[#allocation5 + $0x14c] sm:$0xf] }
  0x39   :  { %v3771_v56 = vpack.c.bf16 %v105_v53, %v103_v52  ;;  %v2417_v3 = vld [vmem:[#allocation5 + $0x168] sm:$0xf0]  ;;  %v2672_v7 = vor.u32 %v3378_v1, %v2671_v62  ;;  %v2383_v9 = vld [vmem:[#allocation5 + $0x108] sm:$0xf] }
  0x3a   :  { %916 = vmatpush.bf16.msra.mxu1 %v2504_v35  ;;  %944 = vmatpush.bf16.msra.mxu3 %v2508_v39  ;;  %v3374_v4 = vld [vmem:[#allocation5 + $0x34c] sm:$0xf]  ;;  %v2420_v8 = vor.u32 %v3310_v2, %v2417_v3  ;;  %v3306_v10 = vld [vmem:[#allocation5 + $0x124] sm:$0xf0] }
  0x3b   :  { %931 = vmatmul.bf16.vlgmr.msra.gmra.mxu2 %v3771_v56  ;;  %v2673_v5 = vld [vmem:[#allocation5 + $0x368] sm:$0xf0]  ;;  %903 = vmatmul.bf16.vlgmr.msra.gmra.mxu0 %v3771_v56  ;;  %v2639_v11 = vld [vmem:[#allocation5 + $0x308] sm:$0xf]  ;;  %v2384_v18 = vor.u32 %v3306_v10, %v2383_v9  ;;  %v3327_v9 = vld [vmem:[#allocation5 + $0x1d4] sm:$0xf] }
  0x3c   :  { %951 = vmatpush.bf16.msrb.mxu0 %v2480_v40  ;;  %979 = vmatpush.bf16.msrb.mxu2 %v2484_v44  ;;  %v2676_v12 = vor.u32 %v3374_v4, %v2673_v5  ;;  %v3370_v13 = vld [vmem:[#allocation5 + $0x324] sm:$0xf0]  ;;  %v3302_v14 = vld [vmem:[#allocation5 + $0x10c] sm:$0xf]  ;;  %v2487_v4 = vld [vmem:[#allocation5 + $0x1d0] sm:$0xf] }
  0x3d   :  { %945 = vmatmul.bf16.vlgmr.msra.gmra.mxu3 %v3773_v63  ;;  %917 = vmatmul.bf16.vlgmr.msra.gmra.mxu1 %v3773_v63  ;;  %v2385_v15 = vld [vmem:[#allocation5 + $0x128] sm:$0xf0]  ;;  %v2640_v19 = vor.u32 %v3370_v13, %v2639_v11  ;;  %v2351_v21 = vld [vmem:[#allocation5 + $0xc8] sm:$0xf]  ;;  %v3331_v5 = vld [vmem:[#allocation5 + $0x1ec] sm:$0xf0] }
  0x3e   :  { %965 = vmatpush.bf16.msrb.mxu1 %v2736_v43  ;;  %993 = vmatpush.bf16.msrb.mxu3 %v2740_v48  ;;  %v3366_v16 = vld [vmem:[#allocation5 + $0x30c] sm:$0xf]  ;;  %v2388_v20 = vor.u32 %v3302_v14, %v2385_v15  ;;  %v3298_v22 = vld [vmem:[#allocation5 + $0xe4] sm:$0xf0]  ;;  %v2489_v10 = vld [vmem:[#allocation5 + $0x1f0] sm:$0xf0] }
  0x3f   :  { %v2641_v17 = vld [vmem:[#allocation5 + $0x328] sm:$0xf0]  ;;  %v2607_v23 = vld [vmem:[#allocation5 + $0x2c8] sm:$0xf]  ;;  %v2352_v30 = vor.u32 %v3298_v22, %v2351_v21  ;;  %v3391_v13 = vld [vmem:[#allocation5 + $0x3d4] sm:$0xf] }
  0x40   :  { %952 = vmatpush.bf16.msrb.mxu0 %v2448_v55  ;;  %980 = vmatpush.bf16.msrb.mxu2 %v2452_v59  ;;  %v2644_v24 = vor.u32 %v3366_v16, %v2641_v17  ;;  %v3362_v25 = vld [vmem:[#allocation5 + $0x2e4] sm:$0xf0]  ;;  %v3294_v26 = vld [vmem:[#allocation5 + $0xcc] sm:$0xf]  ;;  %v2745_v14 = vld [vmem:[#allocation5 + $0x3f0] sm:$0xf0]  ;;  %v2488_v16 = vor.u32 %v3331_v5, %v2487_v4 }
  0x41   :  { %v2353_v27 = vld [vmem:[#allocation5 + $0xe8] sm:$0xf0]  ;;  %v2608_v31 = vor.u32 %v3362_v25, %v2607_v23  ;;  %v2319_v33 = vld [vmem:[#allocation5 + $0x88] sm:$0xf]  ;;  %v2711_v21 = vld [vmem:[#allocation5 + $0x390] sm:$0xf]  ;;  %v2748_v22 = vor.u32 %v3391_v13, %v2745_v14 }
  0x42   :  { %966 = vmatpush.bf16.msrb.mxu1 %v2704_v58  ;;  %994 = vmatpush.bf16.msrb.mxu3 %v2708_v0  ;;  %v3358_v28 = vld [vmem:[#allocation5 + $0x2cc] sm:$0xf]  ;;  %v2356_v32 = vor.u32 %v3294_v26, %v2353_v27  ;;  %v3290_v34 = vld [vmem:[#allocation5 + $0xa4] sm:$0xf0]  ;;  %v3387_v23 = vld [vmem:[#allocation5 + $0x3ac] sm:$0xf0] }
  0x43   :  { %v2609_v29 = vld [vmem:[#allocation5 + $0x2e8] sm:$0xf0]  ;;  %v2575_v35 = vld [vmem:[#allocation5 + $0x288] sm:$0xf]  ;;  %v2320_v42 = vor.u32 %v3290_v34, %v2319_v33  ;;  %v2457_v25 = vld [vmem:[#allocation5 + $0x1b0] sm:$0xf0] }
  0x44   :  { %953 = vmatpush.bf16.msrb.mxu0 %v2416_v6  ;;  %981 = vmatpush.bf16.msrb.mxu2 %v2420_v8  ;;  %v2612_v36 = vor.u32 %v3358_v28, %v2609_v29  ;;  %v3354_v37 = vld [vmem:[#allocation5 + $0x2a4] sm:$0xf0]  ;;  %v3286_v38 = vld [vmem:[#allocation5 + $0x8c] sm:$0xf]  ;;  %v2743_v6 = vld [vmem:[#allocation5 + $0x3d0] sm:$0xf]  ;;  %v2712_v29 = vor.u32 %v3387_v23, %v2711_v21 }
  0x45   :  { %v2321_v39 = vld [vmem:[#allocation5 + $0xa8] sm:$0xf0]  ;;  %v2576_v43 = vor.u32 %v3354_v37, %v2575_v35  ;;  %v2287_v45 = vld [vmem:[#allocation5 + $0x48] sm:$0xf]  ;;  %v3395_v8 = vld [vmem:[#allocation5 + $0x3ec] sm:$0xf0] }
  0x46   :  { %967 = vmatpush.bf16.msrb.mxu1 %v2672_v7  ;;  %995 = vmatpush.bf16.msrb.mxu3 %v2676_v12  ;;  %v3350_v40 = vld [vmem:[#allocation5 + $0x28c] sm:$0xf]  ;;  %v2324_v44 = vor.u32 %v3286_v38, %v2321_v39  ;;  %v3282_v46 = vld [vmem:[#allocation5 + $0x64] sm:$0xf0]  ;;  %v2744_v17 = vor.u32 %v3395_v8, %v2743_v6  ;;  %v3383_v26 = vld [vmem:[#allocation5 + $0x394] sm:$0xf] }
  0x47   :  { %v2577_v41 = vld [vmem:[#allocation5 + $0x2a8] sm:$0xf0]  ;;  %v2543_v47 = vld [vmem:[#allocation5 + $0x248] sm:$0xf]  ;;  %v2288_v54 = vor.u32 %v3282_v46, %v2287_v45  ;;  %v2713_v27 = vld [vmem:[#allocation5 + $0x3b0] sm:$0xf0] }
  0x48   :  { %954 = vmatpush.bf16.msrb.mxu0 %v2384_v18  ;;  %982 = vmatpush.bf16.msrb.mxu2 %v2388_v20  ;;  %v2580_v48 = vor.u32 %v3350_v40, %v2577_v41  ;;  %v3346_v49 = vld [vmem:[#allocation5 + $0x264] sm:$0xf0]  ;;  %v3278_v50 = vld [vmem:[#allocation5 + $0x4c] sm:$0xf]  ;;  %v2492_v18 = vor.u32 %v3327_v9, %v2489_v10  ;;  %v3323_v20 = vld [vmem:[#allocation5 + $0x1ac] sm:$0xf0]  ;;  %v2716_v34 = vor.u32 %v3383_v26, %v2713_v27 }
  0x49   :  { %v2289_v51 = vld [vmem:[#allocation5 + $0x68] sm:$0xf0]  ;;  %v2255_v55 = vld [vmem:[#allocation5 + $0x8] sm:$0xf]  ;;  %v2544_v58 = vor.u32 %v3346_v49, %v2543_v47  ;;  %v2679_v33 = vld [vmem:[#allocation5 + $0x350] sm:$0xf] }
  0x4a   :  { %968 = vmatpush.bf16.msrb.mxu1 %v2640_v19  ;;  %996 = vmatpush.bf16.msrb.mxu3 %v2644_v24  ;;  %v3342_v52 = vld [vmem:[#allocation5 + $0x24c] sm:$0xf]  ;;  %v3274_v57 = vld [vmem:[#allocation5 + $0x24] sm:$0xf0]  ;;  %v2292_v59 = vor.u32 %v3278_v50, %v2289_v51  ;;  %v2455_v19 = vld [vmem:[#allocation5 + $0x190] sm:$0xf] }
  0x4b   :  { %v2545_v53 = vld [vmem:[#allocation5 + $0x268] sm:$0xf0]  ;;  %v2511_v60 = vld [vmem:[#allocation5 + $0x208] sm:$0xf]  ;;  %v2256_v7 = vor.u32 %v3274_v57, %v2255_v55  ;;  %v3319_v24 = vld [vmem:[#allocation5 + $0x194] sm:$0xf]  ;;  %v2456_v28 = vor.u32 %v3323_v20, %v2455_v19 }
  0x4c   :  { %955 = vmatpush.bf16.msrb.mxu0 %v2352_v30  ;;  %983 = vmatpush.bf16.msrb.mxu2 %v2356_v32  ;;  %v3338_v61 = vld [vmem:[#allocation5 + $0x224] sm:$0xf0]  ;;  %v3270_v62 = vld [vmem:[#allocation5 + $0xc] sm:$0xf]  ;;  %v2548_v0 = vor.u32 %v3342_v52, %v2545_v53  ;;  %v2460_v30 = vor.u32 %v3319_v24, %v2457_v25  ;;  %v3315_v32 = vld [vmem:[#allocation5 + $0x16c] sm:$0xf0] }
  0x4d   :  { %v2257_v1 = vld [vmem:[#allocation5 + $0x28] sm:$0xf0]  ;;  %v2512_v11 = vor.u32 %v3338_v61, %v2511_v60  ;;  %v3379_v35 = vld [vmem:[#allocation5 + $0x36c] sm:$0xf0]  ;;  %v2425_v37 = vld [vmem:[#allocation5 + $0x170] sm:$0xf0] }
  0x4e   :  { %969 = vmatpush.bf16.msrb.mxu1 %v2608_v31  ;;  %997 = vmatpush.bf16.msrb.mxu3 %v2612_v36  ;;  %v3334_v2 = vld [vmem:[#allocation5 + $0x20c] sm:$0xf]  ;;  %v2260_v12 = vor.u32 %v3270_v62, %v2257_v1  ;;  %v2423_v31 = vld [vmem:[#allocation5 + $0x150] sm:$0xf]  ;;  %v3311_v36 = vld [vmem:[#allocation5 + $0x154] sm:$0xf]  ;;  %v2680_v41 = vor.u32 %v3379_v35, %v2679_v33 }
  0x4f   :  { %v2513_v3 = vld [vmem:[#allocation5 + $0x228] sm:$0xf0]  ;;  %v3375_v38 = vld [vmem:[#allocation5 + $0x354] sm:$0xf]  ;;  %v2424_v40 = vor.u32 %v3315_v32, %v2423_v31  ;;  %v2647_v45 = vld [vmem:[#allocation5 + $0x310] sm:$0xf] }
  0x50   :  { %956 = vmatpush.bf16.msrb.mxu0 %v2320_v42  ;;  %984 = vmatpush.bf16.msrb.mxu2 %v2324_v44  ;;  %v2516_v15 = vor.u32 %v3334_v2, %v2513_v3  ;;  %v2681_v39 = vld [vmem:[#allocation5 + $0x370] sm:$0xf0]  ;;  %v2428_v42 = vor.u32 %v3311_v36, %v2425_v37  ;;  %v3307_v44 = vld [vmem:[#allocation5 + $0x12c] sm:$0xf0] }
  0x51   :  { %v2684_v46 = vor.u32 %v3375_v38, %v2681_v39  ;;  %v3371_v47 = vld [vmem:[#allocation5 + $0x32c] sm:$0xf0]  ;;  %v2393_v49 = vld [vmem:[#allocation5 + $0x130] sm:$0xf0]  ;;  %v2495_v38 = vld [vmem:[#allocation5 + $0x1d8] sm:$0xf] }
  0x52   :  { %970 = vmatpush.bf16.msrb.mxu1 %v2576_v43  ;;  %998 = vmatpush.bf16.msrb.mxu3 %v2580_v48  ;;  %v2391_v43 = vld [vmem:[#allocation5 + $0x110] sm:$0xf]  ;;  %v3303_v48 = vld [vmem:[#allocation5 + $0x114] sm:$0xf]  ;;  %v2648_v53 = vor.u32 %v3371_v47, %v2647_v45  ;;  %v3332_v39 = vld [vmem:[#allocation5 + $0x1f4] sm:$0xf0] }
  0x53   :  { %v3367_v50 = vld [vmem:[#allocation5 + $0x314] sm:$0xf]  ;;  %v2392_v52 = vor.u32 %v3307_v44, %v2391_v43  ;;  %v2359_v55 = vld [vmem:[#allocation5 + $0xd0] sm:$0xf]  ;;  %v3328_v43 = vld [vmem:[#allocation5 + $0x1dc] sm:$0xf] }
  0x54   :  { %957 = vmatpush.bf16.msrb.mxu0 %v2288_v54  ;;  %985 = vmatpush.bf16.msrb.mxu2 %v2292_v59  ;;  %v2649_v51 = vld [vmem:[#allocation5 + $0x330] sm:$0xf0]  ;;  %v2396_v54 = vor.u32 %v3303_v48, %v2393_v49  ;;  %v3299_v57 = vld [vmem:[#allocation5 + $0xec] sm:$0xf0]  ;;  %v2497_v44 = vld [vmem:[#allocation5 + $0x1f8] sm:$0xf0] }
  0x55   :  { %v2652_v59 = vor.u32 %v3367_v50, %v2649_v51  ;;  %v3363_v60 = vld [vmem:[#allocation5 + $0x2ec] sm:$0xf0]  ;;  %v3295_v61 = vld [vmem:[#allocation5 + $0xd4] sm:$0xf]  ;;  %v2360_v2 = vor.u32 %v3299_v57, %v2359_v55  ;;  %v3392_v47 = vld [vmem:[#allocation5 + $0x3dc] sm:$0xf]  ;;  %v2496_v50 = vor.u32 %v3332_v39, %v2495_v38 }
  0x56   :  { %971 = vmatpush.bf16.msrb.mxu1 %v2544_v58  ;;  %999 = vmatpush.bf16.msrb.mxu3 %v2548_v0  ;;  %v2615_v58 = vld [vmem:[#allocation5 + $0x2d0] sm:$0xf]  ;;  %v2361_v62 = vld [vmem:[#allocation5 + $0xf0] sm:$0xf0]  ;;  %v2753_v48 = vld [vmem:[#allocation5 + $0x3f8] sm:$0xf0] }
  0x57   :  { %v3359_v0 = vld [vmem:[#allocation5 + $0x2d4] sm:$0xf]  ;;  %v2616_v3 = vor.u32 %v3363_v60, %v2615_v58  ;;  %v2364_v4 = vor.u32 %v3295_v61, %v2361_v62  ;;  %v2327_v5 = vld [vmem:[#allocation5 + $0x90] sm:$0xf]  ;;  %v2719_v55 = vld [vmem:[#allocation5 + $0x398] sm:$0xf]  ;;  %v2756_v57 = vor.u32 %v3392_v47, %v2753_v48 }
  0x58   :  { %958 = vmatpush.bf16.msrb.mxu0 %v2256_v7  ;;  %986 = vmatpush.bf16.msrb.mxu2 %v2260_v12  ;;  %v2617_v1 = vld [vmem:[#allocation5 + $0x2f0] sm:$0xf0]  ;;  %v3291_v6 = vld [vmem:[#allocation5 + $0xac] sm:$0xf0]  ;;  %v3388_v58 = vld [vmem:[#allocation5 + $0x3b4] sm:$0xf0] }
  0x59   :  { %v2583_v7 = vld [vmem:[#allocation5 + $0x290] sm:$0xf]  ;;  %v2620_v8 = vor.u32 %v3359_v0, %v2617_v1  ;;  %v3287_v10 = vld [vmem:[#allocation5 + $0x94] sm:$0xf]  ;;  %v2328_v14 = vor.u32 %v3291_v6, %v2327_v5  ;;  %v2465_v60 = vld [vmem:[#allocation5 + $0x1b8] sm:$0xf0]  ;;  %v2720_v1 = vor.u32 %v3388_v58, %v2719_v55 }
  0x5a   :  { %972 = vmatpush.bf16.msrb.mxu1 %v2512_v11  ;;  %1000 = vmatpush.bf16.msrb.mxu3 %v2516_v15  ;;  %v3355_v9 = vld [vmem:[#allocation5 + $0x2ac] sm:$0xf0]  ;;  %v2329_v11 = vld [vmem:[#allocation5 + $0xb0] sm:$0xf0]  ;;  %v3384_v61 = vld [vmem:[#allocation5 + $0x39c] sm:$0xf] }
  0x5b   :  { %959 = vmatmul.bf16.vlgmr.msrb.gmra.mxu0 %v3771_v56  ;;  %987 = vmatmul.bf16.vlgmr.msrb.gmra.mxu2 %v3771_v56  ;;  %v3351_v12 = vld [vmem:[#allocation5 + $0x294] sm:$0xf]  ;;  %v2584_v15 = vor.u32 %v3355_v9, %v2583_v7  ;;  %v2551_v19 = vld [vmem:[#allocation5 + $0x250] sm:$0xf]  ;;  %v2721_v62 = vld [vmem:[#allocation5 + $0x3b8] sm:$0xf0] }
  0x5c   :  { %1007 = vmatpush.bf16.msra.mxu0 %v2488_v16  ;;  %1035 = vmatpush.bf16.msra.mxu2 %v2492_v18  ;;  %v2585_v13 = vld [vmem:[#allocation5 + $0x2b0] sm:$0xf0]  ;;  %v2332_v16 = vor.u32 %v3287_v10, %v2329_v11  ;;  %v3283_v18 = vld [vmem:[#allocation5 + $0x6c] sm:$0xf0]  ;;  %v2687_v5 = vld [vmem:[#allocation5 + $0x358] sm:$0xf]  ;;  %v2724_v6 = vor.u32 %v3384_v61, %v2721_v62 }
  0x5d   :  { %973 = vmatmul.bf16.vlgmr.msrb.gmra.mxu1 %v3773_v63  ;;  %1001 = vmatmul.bf16.vlgmr.msrb.gmra.mxu3 %v3773_v63  ;;  %v2588_v20 = vor.u32 %v3351_v12, %v2585_v13  ;;  %v3347_v21 = vld [vmem:[#allocation5 + $0x26c] sm:$0xf0]  ;;  %v2297_v23 = vld [vmem:[#allocation5 + $0x70] sm:$0xf0]  ;;  %v3380_v7 = vld [vmem:[#allocation5 + $0x374] sm:$0xf0] }
  0x5e   :  { %1021 = vmatpush.bf16.msra.mxu1 %v2744_v17  ;;  %1049 = vmatpush.bf16.msra.mxu3 %v2748_v22  ;;  %v2295_v17 = vld [vmem:[#allocation5 + $0x50] sm:$0xf]  ;;  %v3279_v22 = vld [vmem:[#allocation5 + $0x54] sm:$0xf]  ;;  %v2433_v9 = vld [vmem:[#allocation5 + $0x178] sm:$0xf0]  ;;  %v2688_v13 = vor.u32 %v3380_v7, %v2687_v5 }
  0x5f   :  { %v3343_v24 = vld [vmem:[#allocation5 + $0x254] sm:$0xf]  ;;  %v2296_v26 = vor.u32 %v3283_v18, %v2295_v17  ;;  %v2263_v27 = vld [vmem:[#allocation5 + $0x10] sm:$0xf]  ;;  %v3376_v10 = vld [vmem:[#allocation5 + $0x35c] sm:$0xf] }
  0x60   :  { %1008 = vmatpush.bf16.msra.mxu0 %v2456_v28  ;;  %1036 = vmatpush.bf16.msra.mxu2 %v2460_v30  ;;  %v2553_v25 = vld [vmem:[#allocation5 + $0x270] sm:$0xf0]  ;;  %v3275_v28 = vld [vmem:[#allocation5 + $0x2c] sm:$0xf0]  ;;  %v2300_v30 = vor.u32 %v3279_v22, %v2297_v23  ;;  %v2689_v11 = vld [vmem:[#allocation5 + $0x378] sm:$0xf0] }
  0x61   :  { %v2519_v31 = vld [vmem:[#allocation5 + $0x210] sm:$0xf]  ;;  %v3271_v33 = vld [vmem:[#allocation5 + $0x14] sm:$0xf]  ;;  %v2655_v17 = vld [vmem:[#allocation5 + $0x318] sm:$0xf]  ;;  %v2692_v18 = vor.u32 %v3376_v10, %v2689_v11 }
  0x62   :  { %1022 = vmatpush.bf16.msra.mxu1 %v2712_v29  ;;  %1050 = vmatpush.bf16.msra.mxu3 %v2716_v34  ;;  %v2552_v29 = vor.u32 %v3347_v21, %v2551_v19  ;;  %v3339_v32 = vld [vmem:[#allocation5 + $0x22c] sm:$0xf0]  ;;  %v2556_v34 = vor.u32 %v3343_v24, %v2553_v25  ;;  %v2265_v35 = vld [vmem:[#allocation5 + $0x30] sm:$0xf0]  ;;  %v3372_v19 = vld [vmem:[#allocation5 + $0x334] sm:$0xf0] }
  0x63   :  { %v3335_v36 = vld [vmem:[#allocation5 + $0x214] sm:$0xf]  ;;  %v2520_v45 = vor.u32 %v3339_v32, %v2519_v31  ;;  %v2401_v21 = vld [vmem:[#allocation5 + $0x138] sm:$0xf0]  ;;  %v2656_v25 = vor.u32 %v3372_v19, %v2655_v17  ;;  %v3364_v31 = vld [vmem:[#allocation5 + $0x2f4] sm:$0xf0] }
  0x64   :  { %1009 = vmatpush.bf16.msra.mxu0 %v2424_v40  ;;  %1037 = vmatpush.bf16.msra.mxu2 %v2428_v42  ;;  %v2521_v37 = vld [vmem:[#allocation5 + $0x230] sm:$0xf0]  ;;  %v2751_v40 = vld [vmem:[#allocation5 + $0x3d8] sm:$0xf]  ;;  %v3368_v22 = vld [vmem:[#allocation5 + $0x31c] sm:$0xf] }
  0x65   :  { %v3396_v42 = vld [vmem:[#allocation5 + $0x3f4] sm:$0xf0]  ;;  %v2524_v49 = vor.u32 %v3335_v36, %v2521_v37  ;;  %v2657_v23 = vld [vmem:[#allocation5 + $0x338] sm:$0xf0]  ;;  %v3412_v11 = vld [vmem:[#allocation8 + $0x74] sm:$0xf0] }
  0x66   :  { %1023 = vmatpush.bf16.msra.mxu1 %v2680_v41  ;;  %1051 = vmatpush.bf16.msra.mxu3 %v2684_v46  ;;  %v2264_v41 = vor.u32 %v3275_v28, %v2263_v27  ;;  %v2268_v46 = vor.u32 %v3271_v33, %v2265_v35  ;;  %v2752_v51 = vor.u32 %v3396_v42, %v2751_v40  ;;  %v2367_v27 = vld [vmem:[#allocation5 + $0xd8] sm:$0xf]  ;;  %v3296_v32 = vld [vmem:[#allocation5 + $0xdc] sm:$0xf]  ;;  %v2807_v19 = vld [vmem:[#allocation8 + $0x60] sm:$0xf] }
  0x67   :  { %v3300_v28 = vld [vmem:[#allocation5 + $0xf4] sm:$0xf0]  ;;  %v2369_v33 = vld [vmem:[#allocation5 + $0xf8] sm:$0xf0] }
  0x68   :  { %1010 = vmatpush.bf16.msra.mxu0 %v2392_v52  ;;  %1038 = vmatpush.bf16.msra.mxu2 %v2396_v54  ;;  %v2500_v52 = vor.u32 %v3328_v43, %v2497_v44  ;;  %v3324_v54 = vld [vmem:[#allocation5 + $0x1b4] sm:$0xf0]  ;;  %v2625_v35 = vld [vmem:[#allocation5 + $0x2f8] sm:$0xf0]  ;;  %v2368_v36 = vor.u32 %v3300_v28, %v2367_v27  ;;  %v2372_v38 = vor.u32 %v3296_v32, %v2369_v33  ;;  %v3406_v32 = vld [vmem:[#allocation8 + $0x44] sm:$0xf0] }
  0x69   :  { %v2335_v39 = vld [vmem:[#allocation5 + $0x98] sm:$0xf]  ;;  %v3288_v44 = vld [vmem:[#allocation5 + $0x9c] sm:$0xf] }
  0x6a   :  { %1024 = vmatpush.bf16.msra.mxu1 %v2648_v53  ;;  %1052 = vmatpush.bf16.msra.mxu3 %v2652_v59  ;;  %v2463_v53 = vld [vmem:[#allocation5 + $0x198] sm:$0xf]  ;;  %v3320_v59 = vld [vmem:[#allocation5 + $0x19c] sm:$0xf] }
  0x6b   :  { %v2464_v0 = vor.u32 %v3324_v54, %v2463_v53  ;;  %v3292_v40 = vld [vmem:[#allocation5 + $0xb4] sm:$0xf0]  ;;  %v2593_v47 = vld [vmem:[#allocation5 + $0x2b8] sm:$0xf0] }
  0x6c   :  { %1011 = vmatpush.bf16.msra.mxu0 %v2360_v2  ;;  %1039 = vmatpush.bf16.msra.mxu2 %v2364_v4  ;;  %v2468_v2 = vor.u32 %v3320_v59, %v2465_v60  ;;  %v3316_v4 = vld [vmem:[#allocation5 + $0x174] sm:$0xf0]  ;;  %v2336_v48 = vor.u32 %v3292_v40, %v2335_v39  ;;  %v2305_v58 = vld [vmem:[#allocation5 + $0x78] sm:$0xf0] }
  0x6d   :  { %v3356_v43 = vld [vmem:[#allocation5 + $0x2b4] sm:$0xf0]  ;;  %v3344_v59 = vld [vmem:[#allocation5 + $0x25c] sm:$0xf] }
  0x6e   :  { %1025 = vmatpush.bf16.msra.mxu1 %v2616_v3  ;;  %1053 = vmatpush.bf16.msra.mxu3 %v2620_v8  ;;  %v2431_v3 = vld [vmem:[#allocation5 + $0x158] sm:$0xf]  ;;  %v3312_v8 = vld [vmem:[#allocation5 + $0x15c] sm:$0xf] }
  0x6f   :  { %v2432_v12 = vor.u32 %v3316_v4, %v2431_v3  ;;  %v2559_v53 = vld [vmem:[#allocation5 + $0x258] sm:$0xf]  ;;  %v2561_v60 = vld [vmem:[#allocation5 + $0x278] sm:$0xf0] }
  0x70   :  { %1012 = vmatpush.bf16.msra.mxu0 %v2328_v14  ;;  %1040 = vmatpush.bf16.msra.mxu2 %v2332_v16  ;;  %v2436_v14 = vor.u32 %v3312_v8, %v2433_v9  ;;  %v3308_v16 = vld [vmem:[#allocation5 + $0x134] sm:$0xf0]  ;;  %v2564_v5 = vor.u32 %v3344_v59, %v2561_v60  ;;  %v2273_v7 = vld [vmem:[#allocation5 + $0x38] sm:$0xf0]  ;;  %v3416_v59 = vld [vmem:[#allocation8 + $0x94] sm:$0xf0] }
  0x71   :  { %v3348_v55 = vld [vmem:[#allocation5 + $0x274] sm:$0xf0]  ;;  %v3336_v8 = vld [vmem:[#allocation5 + $0x21c] sm:$0xf] }
  0x72   :  { %1026 = vmatpush.bf16.msra.mxu1 %v2584_v15  ;;  %1054 = vmatpush.bf16.msra.mxu3 %v2588_v20  ;;  %v2399_v15 = vld [vmem:[#allocation5 + $0x118] sm:$0xf]  ;;  %v3304_v20 = vld [vmem:[#allocation5 + $0x11c] sm:$0xf] }
  0x73   :  { %v2400_v24 = vor.u32 %v3308_v16, %v2399_v15  ;;  %v2271_v62 = vld [vmem:[#allocation5 + $0x18] sm:$0xf]  ;;  %v2529_v9 = vld [vmem:[#allocation5 + $0x238] sm:$0xf0] }
  0x74   :  { %1013 = vmatpush.bf16.msra.mxu0 %v2296_v26  ;;  %1041 = vmatpush.bf16.msra.mxu2 %v2300_v30  ;;  %v2404_v26 = vor.u32 %v3304_v20, %v2401_v21  ;;  %v2660_v30 = vor.u32 %v3368_v22, %v2657_v23  ;;  %v2527_v3 = vld [vmem:[#allocation5 + $0x218] sm:$0xf]  ;;  %v2532_v17 = vor.u32 %v3336_v8, %v2529_v9  ;;  %v3410_v20 = vld [vmem:[#allocation8 + $0x64] sm:$0xf0]  ;;  %v2871_v22 = vld [vmem:[#allocation8 + $0xe0] sm:$0xf] }
  0x75   :  { %v3340_v4 = vld [vmem:[#allocation5 + $0x234] sm:$0xf0]  ;;  %v3426_v23 = vld [vmem:[#allocation8 + $0xe4] sm:$0xf0]  ;;  %v3440_v8 = vld [vmem:[#allocation8 + $0x154] sm:$0xf0] }
  0x76   :  { %1027 = vmatpush.bf16.msra.mxu1 %v2552_v29  ;;  %1055 = vmatpush.bf16.msra.mxu3 %v2556_v34  ;;  %v2623_v29 = vld [vmem:[#allocation5 + $0x2d8] sm:$0xf]  ;;  %v3360_v34 = vld [vmem:[#allocation5 + $0x2dc] sm:$0xf]  ;;  %v2528_v15 = vor.u32 %v3340_v4, %v2527_v3  ;;  %v2872_v27 = vor.u32 %v3426_v23, %v2871_v22  ;;  %v3476_v3 = vld [vmem:[#allocation8 + $0x274] sm:$0xf0] }
  0x77   :  { %v2624_v37 = vor.u32 %v3364_v31, %v2623_v29  ;;  %v2628_v42 = vor.u32 %v3360_v34, %v2625_v35  ;;  %v2815_v10 = vld [vmem:[#allocation8 + $0x70] sm:$0xf]  ;;  %v3424_v29 = vld [vmem:[#allocation8 + $0xd4] sm:$0xf0]  ;;  %v2791_v31 = vld [vmem:[#allocation8 + $0x40] sm:$0xf] }
  0x78   :  { %1014 = vmatpush.bf16.msra.mxu0 %v2264_v41  ;;  %1042 = vmatpush.bf16.msra.mxu2 %v2268_v46  ;;  %v2591_v41 = vld [vmem:[#allocation5 + $0x298] sm:$0xf]  ;;  %v3352_v46 = vld [vmem:[#allocation5 + $0x29c] sm:$0xf]  ;;  %v2855_v34 = vld [vmem:[#allocation8 + $0xc0] sm:$0xf] }
  0x79   :  { %v2596_v54 = vor.u32 %v3352_v46, %v2593_v47  ;;  %v2863_v28 = vld [vmem:[#allocation8 + $0xd0] sm:$0xf]  ;;  %v3422_v35 = vld [vmem:[#allocation8 + $0xc4] sm:$0xf0]  ;;  %v2839_v47 = vld [vmem:[#allocation8 + $0xa0] sm:$0xf] }
  0x7a   :  { %1028 = vmatpush.bf16.msra.mxu1 %v2520_v45  ;;  %1056 = vmatpush.bf16.msra.mxu3 %v2524_v49  ;;  %v2337_v45 = vld [vmem:[#allocation5 + $0xb8] sm:$0xf0]  ;;  %v2592_v49 = vor.u32 %v3356_v43, %v2591_v41  ;;  %v2864_v33 = vor.u32 %v3424_v29, %v2863_v28  ;;  %v2856_v39 = vor.u32 %v3422_v35, %v2855_v34  ;;  %v2847_v40 = vld [vmem:[#allocation8 + $0xb0] sm:$0xf]  ;;  %v2775_v43 = vld [vmem:[#allocation8 + $0x20] sm:$0xf] }
  0x7b   :  { %1015 = vmatmul.bf16.vlgmr.msra.gmra.mxu0 %v3771_v56  ;;  %1043 = vmatmul.bf16.vlgmr.msra.gmra.mxu2 %v3771_v56  ;;  %v2943_v41 = vld [vmem:[#allocation8 + $0x170] sm:$0xf]  ;;  %v3438_v22 = vld [vmem:[#allocation8 + $0x144] sm:$0xf0]  ;;  %v3472_v28 = vld [vmem:[#allocation8 + $0x254] sm:$0xf0] }
  0x7c   :  { %1063 = vmatpush.bf16.msrb.mxu0 %v2496_v50  ;;  %1091 = vmatpush.bf16.msrb.mxu2 %v2500_v52  ;;  %v2340_v50 = vor.u32 %v3288_v44, %v2337_v45  ;;  %v3284_v52 = vld [vmem:[#allocation5 + $0x74] sm:$0xf0]  ;;  %v3402_v44 = vld [vmem:[#allocation8 + $0x24] sm:$0xf0]  ;;  %v3047_v35 = vld [vmem:[#allocation8 + $0x240] sm:$0xf] }
  0x7d   :  { %1029 = vmatmul.bf16.vlgmr.msra.gmra.mxu1 %v3773_v63  ;;  %1057 = vmatmul.bf16.vlgmr.msra.gmra.mxu3 %v3773_v63  ;;  %v3135_v9 = vld [vmem:[#allocation8 + $0x2f0] sm:$0xf] }
  0x7e   :  { %1077 = vmatpush.bf16.msrb.mxu1 %v2752_v51  ;;  %1105 = vmatpush.bf16.msrb.mxu3 %v2756_v57  ;;  %v2303_v51 = vld [vmem:[#allocation5 + $0x58] sm:$0xf]  ;;  %v3280_v57 = vld [vmem:[#allocation5 + $0x5c] sm:$0xf] }
  0x7f   :  { %v2304_v61 = vor.u32 %v3284_v52, %v2303_v51  ;;  %v3400_v51 = vld [vmem:[#allocation8 + $0x14] sm:$0xf0]  ;;  %v2935_v52 = vld [vmem:[#allocation8 + $0x160] sm:$0xf] }
  0x80   :  { %1064 = vmatpush.bf16.msrb.mxu0 %v2464_v0  ;;  %1092 = vmatpush.bf16.msrb.mxu2 %v2468_v2  ;;  %v2560_v0 = vor.u32 %v3348_v55, %v2559_v53  ;;  %v3276_v2 = vld [vmem:[#allocation5 + $0x34] sm:$0xf0] }
  0x81   :  { %v3007_v55 = vld [vmem:[#allocation8 + $0x1f0] sm:$0xf] }
  0x82   :  { %1078 = vmatpush.bf16.msrb.mxu1 %v2720_v1  ;;  %1106 = vmatpush.bf16.msrb.mxu3 %v2724_v6  ;;  %v2308_v1 = vor.u32 %v3280_v57, %v2305_v58  ;;  %v3272_v6 = vld [vmem:[#allocation5 + $0x1c] sm:$0xf]  ;;  %v3460_v57 = vld [vmem:[#allocation8 + $0x1f4] sm:$0xf0]  ;;  %v2831_v58 = vld [vmem:[#allocation8 + $0x90] sm:$0xf] }
  0x83   :  { %v2276_v16 = vor.u32 %v3272_v6, %v2273_v7  ;;  %v2832_v4 = vor.u32 %v3416_v59, %v2831_v58  ;;  %v2927_v6 = vld [vmem:[#allocation8 + $0x150] sm:$0xf]  ;;  %v3414_v7 = vld [vmem:[#allocation8 + $0x84] sm:$0xf0] }
  0x84   :  { %1065 = vmatpush.bf16.msrb.mxu0 %v2432_v12  ;;  %1093 = vmatpush.bf16.msrb.mxu2 %v2436_v14  ;;  %v2272_v12 = vor.u32 %v3276_v2, %v2271_v62  ;;  %v3428_v14 = vld [vmem:[#allocation8 + $0xf4] sm:$0xf0]  ;;  %v3071_v2 = vld [vmem:[#allocation8 + $0x270] sm:$0xf]  ;;  %v3486_v58 = vld [vmem:[#allocation8 + $0x2c4] sm:$0xf0] }
  0x86   :  { %1079 = vmatpush.bf16.msrb.mxu1 %v2688_v13  ;;  %1107 = vmatpush.bf16.msrb.mxu3 %v2692_v18  ;;  %v2879_v13 = vld [vmem:[#allocation8 + $0xf0] sm:$0xf]  ;;  %v2816_v18 = vor.u32 %v3412_v11, %v2815_v10  ;;  %v2928_v10 = vor.u32 %v3440_v8, %v2927_v6  ;;  %v3492_v11 = vld [vmem:[#allocation8 + $0x2f4] sm:$0xf0] }
  0x87   :  { %v2880_v21 = vor.u32 %v3428_v14, %v2879_v13  ;;  %v3458_v13 = vld [vmem:[#allocation8 + $0x1e4] sm:$0xf0]  ;;  %v3432_v8 = vld [vmem:[#allocation8 + $0x114] sm:$0xf0] }
  0x88   :  { %1066 = vmatpush.bf16.msrb.mxu0 %v2400_v24  ;;  %1094 = vmatpush.bf16.msrb.mxu2 %v2404_v26  ;;  %v2808_v24 = vor.u32 %v3410_v20, %v2807_v19  ;;  %v3408_v26 = vld [vmem:[#allocation8 + $0x54] sm:$0xf0]  ;;  %v3474_v19 = vld [vmem:[#allocation8 + $0x264] sm:$0xf0]  ;;  %v3136_v20 = vor.u32 %v3492_v11, %v3135_v9  ;;  %v3103_v11 = vld [vmem:[#allocation8 + $0x2b0] sm:$0xf] }
  0x8a   :  { %1080 = vmatpush.bf16.msrb.mxu1 %v2656_v25  ;;  %1108 = vmatpush.bf16.msrb.mxu3 %v2660_v30  ;;  %v2799_v25 = vld [vmem:[#allocation8 + $0x50] sm:$0xf] }
  0x8b   :  { %v2800_v30 = vor.u32 %v3408_v26, %v2799_v25  ;;  %v3490_v25 = vld [vmem:[#allocation8 + $0x2e4] sm:$0xf0] }
  0x8c   :  { %1067 = vmatpush.bf16.msrb.mxu0 %v2368_v36  ;;  %1095 = vmatpush.bf16.msrb.mxu2 %v2372_v38  ;;  %v2792_v36 = vor.u32 %v3406_v32, %v2791_v31  ;;  %v3404_v38 = vld [vmem:[#allocation8 + $0x34] sm:$0xf0]  ;;  %v2991_v32 = vld [vmem:[#allocation8 + $0x1d0] sm:$0xf] }
  0x8d   :  { %v3791_v31 = vld [vmem:[#allocation7] sm:$0xff] }
  0x8e   :  { %1081 = vmatpush.bf16.msrb.mxu1 %v2624_v37  ;;  %1109 = vmatpush.bf16.msrb.mxu3 %v2628_v42  ;;  %v2783_v37 = vld [vmem:[#allocation8 + $0x30] sm:$0xf] }
  0x8f   :  { %v2784_v42 = vor.u32 %v3404_v38, %v2783_v37  ;;  %v239_v37 = vperm.slane %v3791_v31, 0 }
  0x90   :  { %1068 = vmatpush.bf16.msrb.mxu0 %v2336_v48  ;;  %1096 = vmatpush.bf16.msrb.mxu2 %v2340_v50  ;;  %v3418_v48 = vld [vmem:[#allocation8 + $0xa4] sm:$0xf0]  ;;  %v2767_v50 = vld [vmem:[#allocation8 + $0x10] sm:$0xf] }
  0x91   :  { %v2840_v53 = vor.u32 %v3418_v48, %v2839_v47  ;;  %v2768_v62 = vor.u32 %v3400_v51, %v2767_v50  ;;  %v240_v47 = vperm.slane %v3791_v31, 1  ;;  %v3468_v50 = vld [vmem:[#allocation8 + $0x234] sm:$0xf0] }
  0x92   :  { %1082 = vmatpush.bf16.msrb.mxu1 %v2592_v49  ;;  %1110 = vmatpush.bf16.msrb.mxu3 %v2596_v54  ;;  %v2776_v49 = vor.u32 %v3402_v44, %v2775_v43  ;;  %v3442_v54 = vld [vmem:[#allocation8 + $0x164] sm:$0xf0] }
  0x93   :  { %v2936_v60 = vor.u32 %v3442_v54, %v2935_v52  ;;  %v3434_v54 = vld [vmem:[#allocation8 + $0x124] sm:$0xf0] }
  0x94   :  { %1069 = vmatpush.bf16.msrb.mxu0 %v2304_v61  ;;  %1097 = vmatpush.bf16.msrb.mxu2 %v2308_v1  ;;  %v3008_v61 = vor.u32 %v3460_v57, %v3007_v55  ;;  %v3398_v1 = vld [vmem:[#allocation8 + $0x4] sm:$0xf0]  ;;  %v3111_v57 = vld [vmem:[#allocation8 + $0x2c0] sm:$0xf] }
  0x96   :  { %1083 = vmatpush.bf16.msrb.mxu1 %v2560_v0  ;;  %1111 = vmatpush.bf16.msrb.mxu3 %v2564_v5  ;;  %v2759_v0 = vld [vmem:[#allocation8] sm:$0xf] }
  0x97   :  { %v2823_v5 = vld [vmem:[#allocation8 + $0x80] sm:$0xf]  ;;  %v2760_v14 = vor.u32 %v3398_v1, %v2759_v0 }
  0x98   :  { %1070 = vmatpush.bf16.msrb.mxu0 %v2272_v12  ;;  %1098 = vmatpush.bf16.msrb.mxu2 %v2276_v16  ;;  %v2999_v12 = vld [vmem:[#allocation8 + $0x1e0] sm:$0xf]  ;;  %v3072_v16 = vor.u32 %v3476_v3, %v3071_v2 }
  0x99   :  { %v3031_v3 = vld [vmem:[#allocation8 + $0x220] sm:$0xf] }
  0x9a   :  { %1084 = vmatpush.bf16.msrb.mxu1 %v2528_v15  ;;  %1112 = vmatpush.bf16.msrb.mxu3 %v2532_v17  ;;  %v3000_v15 = vor.u32 %v3458_v13, %v2999_v12  ;;  %v3063_v17 = vld [vmem:[#allocation8 + $0x260] sm:$0xf]  ;;  %v3484_v12 = vld [vmem:[#allocation8 + $0x2b4] sm:$0xf0] }
  0x9b   :  { %1071 = vmatmul.bf16.vlgmr.msrb.gmra.mxu0 %v3771_v56  ;;  %1099 = vmatmul.bf16.vlgmr.msrb.gmra.mxu2 %v3771_v56  ;;  %v3420_v56 = vld [vmem:[#allocation8 + $0xb4] sm:$0xf0]  ;;  %v3064_v26 = vor.u32 %v3474_v19, %v3063_v17 }
  0x9c   :  { %1917 = vmatpush.bf16.msra.mxu0 %v2816_v18  ;;  %v2848_v45 = vor.u32 %v3420_v56, %v2847_v40  ;;  %v2824_v18 = vor.u32 %v3414_v7, %v2823_v5  ;;  %v3436_v40 = vld [vmem:[#allocation8 + $0x134] sm:$0xf0]  ;;  %v2895_v7 = vld [vmem:[#allocation8 + $0x110] sm:$0xf] }
  0x9d   :  { %1085 = vmatmul.bf16.vlgmr.msrb.gmra.mxu1 %v3773_v63  ;;  %1113 = vmatmul.bf16.vlgmr.msrb.gmra.mxu3 %v3773_v63  ;;  %v3444_v63 = vld [vmem:[#allocation8 + $0x174] sm:$0xf0] }
  0x9e   :  { %1931 = vmatpush.bf16.msra.mxu1 %v2880_v21  ;;  %v2944_v46 = vor.u32 %v3444_v63, %v2943_v41  ;;  %1959 = vmatpush.bf16.msra.mxu3 %v3008_v61  ;;  %v2919_v21 = vld [vmem:[#allocation8 + $0x140] sm:$0xf]  ;;  %v3488_v63 = vld [vmem:[#allocation8 + $0x2d4] sm:$0xf0]  ;;  %v2975_v61 = vld [vmem:[#allocation8 + $0x1b0] sm:$0xf] }
  0x9f   :  { %v2920_v23 = vor.u32 %v3438_v22, %v2919_v21  ;;  %v3464_v21 = vld [vmem:[#allocation8 + $0x214] sm:$0xf0] }
  0xa0   :  { %1918 = vmatpush.bf16.msra.mxu0 %v2808_v24  ;;  %1945 = vmatpush.bf16.msra.mxu2 %v2944_v46  ;;  %v3127_v24 = vld [vmem:[#allocation8 + $0x2e0] sm:$0xf]  ;;  %v3454_v46 = vld [vmem:[#allocation8 + $0x1c4] sm:$0xf0] }
  0xa1   :  { %v3128_v29 = vor.u32 %v3490_v25, %v3127_v24  ;;  %v2887_v25 = vld [vmem:[#allocation8 + $0x100] sm:$0xf] }
  0xa2   :  { %1932 = vmatpush.bf16.msra.mxu1 %v2872_v27  ;;  %1960 = vmatpush.bf16.msra.mxu3 %v3000_v15  ;;  %v3055_v27 = vld [vmem:[#allocation8 + $0x250] sm:$0xf]  ;;  %v2967_v15 = vld [vmem:[#allocation8 + $0x1a0] sm:$0xf] }
  0xa4   :  { %1919 = vmatpush.bf16.msra.mxu0 %v2800_v30  ;;  %1946 = vmatpush.bf16.msra.mxu2 %v2936_v60  ;;  %v3056_v30 = vor.u32 %v3472_v28, %v3055_v27  ;;  %v3112_v60 = vor.u32 %v3486_v58, %v3111_v57  ;;  %v3095_v28 = vld [vmem:[#allocation8 + $0x2a0] sm:$0xf]  ;;  %v3506_v58 = vld [vmem:[#allocation8 + $0x364] sm:$0xf0] }
  0xa5   :  { %v3191_v57 = vld [vmem:[#allocation8 + $0x360] sm:$0xf] }
  0xa6   :  { %1933 = vmatpush.bf16.msra.mxu1 %v2864_v33  ;;  %v3456_v33 = vld [vmem:[#allocation8 + $0x1d4] sm:$0xf0] }
  0xa7   :  { %v2992_v34 = vor.u32 %v3456_v33, %v2991_v32 }
  0xa8   :  { %1920 = vmatpush.bf16.msra.mxu0 %v2792_v36  ;;  %1947 = vmatpush.bf16.msra.mxu2 %v2928_v10  ;;  %v3470_v36 = vld [vmem:[#allocation8 + $0x244] sm:$0xf0]  ;;  %v2896_v10 = vor.u32 %v3432_v8, %v2895_v7  ;;  %v2881_v8 = vld [vmem:[#allocation8 + $0xf8] sm:$0xf0] }
  0xa9   :  { %v3048_v38 = vor.u32 %v3470_v36, %v3047_v35  ;;  %1961 = vmatpush.bf16.msra.mxu3 %v2992_v34  ;;  %v2959_v34 = vld [vmem:[#allocation8 + $0x190] sm:$0xf]  ;;  %v3448_v35 = vld [vmem:[#allocation8 + $0x194] sm:$0xf0] }
  0xaa   :  { %1934 = vmatpush.bf16.msra.mxu1 %v2856_v39  ;;  %v2911_v39 = vld [vmem:[#allocation8 + $0x130] sm:$0xf] }
  0xab   :  { %v2912_v41 = vor.u32 %v3436_v40, %v2911_v39  ;;  %v2960_v39 = vor.u32 %v3448_v35, %v2959_v34  ;;  %v3015_v40 = vld [vmem:[#allocation8 + $0x200] sm:$0xf] }
  0xac   :  { %1921 = vmatpush.bf16.msra.mxu0 %v2784_v42  ;;  %1948 = vmatpush.bf16.msra.mxu2 %v2920_v23  ;;  %v3119_v42 = vld [vmem:[#allocation8 + $0x2d0] sm:$0xf] }
  0xad   :  { %v3120_v44 = vor.u32 %v3488_v63, %v3119_v42  ;;  %v3199_v63 = vld [vmem:[#allocation8 + $0x370] sm:$0xf] }
  0xae   :  { %1935 = vmatpush.bf16.msra.mxu1 %v2848_v45  ;;  %v2983_v45 = vld [vmem:[#allocation8 + $0x1c0] sm:$0xf] }
  0xaf   :  { %v2984_v48 = vor.u32 %v3454_v46, %v2983_v45 }
  0xb0   :  { %1922 = vmatpush.bf16.msra.mxu0 %v2776_v49  ;;  %1949 = vmatpush.bf16.msra.mxu2 %v2912_v41  ;;  %v3039_v49 = vld [vmem:[#allocation8 + $0x230] sm:$0xf] }
  0xb1   :  { %v3040_v52 = vor.u32 %v3468_v50, %v3039_v49  ;;  %1962 = vmatpush.bf16.msra.mxu3 %v2984_v48  ;;  %v2817_v48 = vld [vmem:[#allocation8 + $0x78] sm:$0xf0]  ;;  %v3087_v49 = vld [vmem:[#allocation8 + $0x290] sm:$0xf]  ;;  %v3480_v50 = vld [vmem:[#allocation8 + $0x294] sm:$0xf0] }
  0xb2   :  { %1936 = vmatpush.bf16.msra.mxu1 %v2840_v53  ;;  %v2903_v53 = vld [vmem:[#allocation8 + $0x120] sm:$0xf] }
  0xb3   :  { %v2904_v55 = vor.u32 %v3434_v54, %v2903_v53  ;;  %v3446_v53 = vld [vmem:[#allocation8 + $0x184] sm:$0xf0] }
  0xb4   :  { %1923 = vmatpush.bf16.msra.mxu0 %v2768_v62  ;;  %v3452_v62 = vld [vmem:[#allocation8 + $0x1b4] sm:$0xf0] }
  0xb5   :  { %1950 = vmatpush.bf16.msra.mxu2 %v2904_v55  ;;  %v2976_v2 = vor.u32 %v3452_v62, %v2975_v61  ;;  %v3192_v61 = vor.u32 %v3506_v58, %v3191_v57  ;;  %v2809_v62 = vld [vmem:[#allocation8 + $0x68] sm:$0xf0] }
  0xb6   :  { %1937 = vmatpush.bf16.msra.mxu1 %v2832_v4  ;;  %v3466_v4 = vld [vmem:[#allocation8 + $0x224] sm:$0xf0]  ;;  %v2777_v58 = vld [vmem:[#allocation8 + $0x28] sm:$0xf0] }
  0xb7   :  { %v3032_v6 = vor.u32 %v3466_v4, %v3031_v3  ;;  %1963 = vmatpush.bf16.msra.mxu3 %v2976_v2  ;;  %v3263_v4 = vld [vmem:[#allocation8 + $0x3f0] sm:$0xf] }
  0xb8   :  { %1924 = vmatpush.bf16.msra.mxu0 %v2760_v14  ;;  %v904_v56 = vpop.f32.mrf.mxu0  ;;  %v3104_v14 = vor.u32 %v3484_v12, %v3103_v11 }
  0xb9   :  { %v905_v51 = vadd.f32 %v904_v56, %v239_v37  ;;  %1951 = vmatpush.bf16.msra.mxu2 %v2896_v10  ;;  %v3462_v56 = vld [vmem:[#allocation8 + $0x204] sm:$0xf0]  ;;  %v3504_v10 = vld [vmem:[#allocation8 + $0x354] sm:$0xf0] }
  0xba   :  { %1938 = vmatpush.bf16.msra.mxu1 %v2824_v18  ;;  %v918_v43 = vpop.f32.mrf.mxu1  ;;  %v3016_v42 = vor.u32 %v3462_v56, %v3015_v40  ;;  %v3403_v40 = vld [vmem:[#allocation8 + $0x34] sm:$0xf] }
  0xbb   :  { %v919_v5 = vadd.f32 %v918_v43, %v905_v51  ;;  %v3508_v43 = vld [vmem:[#allocation8 + $0x374] sm:$0xf0]  ;;  %v3088_v51 = vor.u32 %v3480_v50, %v3087_v49  ;;  %v2857_v50 = vld [vmem:[#allocation8 + $0xc8] sm:$0xf0] }
  0xbc   :  { %1973 = vmatpush.bf16.msrb.mxu0 %v3072_v16  ;;  %v3450_v16 = vld [vmem:[#allocation8 + $0x1a4] sm:$0xf0]  ;;  %v3200_v46 = vor.u32 %v3508_v43, %v3199_v63  ;;  %v2785_v63 = vld [vmem:[#allocation8 + $0x38] sm:$0xf0] }
  0xbd   :  { %v2968_v19 = vor.u32 %v3450_v16, %v2967_v15  ;;  %v1119_v22 = vmax.f32 %v919_v5, 0.0  ;;  %v3524_v5 = vld [vmem:[#allocation8 + $0x3f4] sm:$0xf0]  ;;  %v3255_v15 = vld [vmem:[#allocation8 + $0x3e0] sm:$0xf]  ;;  %v2788_v43 = vor.u32 %v3403_v40, %v2785_v63 }
  0xbe   :  { %1987 = vmatpush.bf16.msrb.mxu1 %v3136_v20  ;;  %v932_v59 = vpop.f32.mrf.mxu2  ;;  %v3023_v20 = vld [vmem:[#allocation8 + $0x210] sm:$0xf]  ;;  %v3264_v7 = vor.u32 %v3524_v5, %v3263_v4  ;;  %v3512_v40 = vld [vmem:[#allocation8 + $0x394] sm:$0xf0] }
  0xbf   :  { %v933_v0 = vadd.f32 %v932_v59, %v240_v47  ;;  %v3024_v24 = vor.u32 %v3464_v21, %v3023_v20  ;;  %1964 = vmatpush.bf16.msra.mxu3 %v2968_v19  ;;  %v3409_v59 = vld [vmem:[#allocation8 + $0x64] sm:$0xf]  ;;  %v2873_v19 = vld [vmem:[#allocation8 + $0xe8] sm:$0xf0] }
  0xc0   :  { %1974 = vmatpush.bf16.msrb.mxu0 %v3064_v26  ;;  %v946_v1 = vpop.f32.mrf.mxu3  ;;  %v906_v9 = vpop.f32.mrf.mxu0  ;;  %v3430_v26 = vld [vmem:[#allocation8 + $0x104] sm:$0xf0]  ;;  %v2812_v2 = vor.u32 %v3409_v59, %v2809_v62 }
  0xc1   :  { %v907_v13 = vadd.f32 %v906_v9, %v239_v37  ;;  %v947_v17 = vadd.f32 %v946_v1, %v933_v0  ;;  %v2888_v27 = vor.u32 %v3430_v26, %v2887_v25  ;;  %v3079_v0 = vld [vmem:[#allocation8 + $0x280] sm:$0xf]  ;;  %v3478_v1 = vld [vmem:[#allocation8 + $0x284] sm:$0xf0]  ;;  %v3183_v9 = vld [vmem:[#allocation8 + $0x350] sm:$0xf] }
  0xc2   :  { %1988 = vmatpush.bf16.msrb.mxu1 %v3128_v29  ;;  %v920_v18 = vpop.f32.mrf.mxu1  ;;  %v3482_v29 = vld [vmem:[#allocation8 + $0x2a4] sm:$0xf0]  ;;  %v3080_v3 = vor.u32 %v3478_v1, %v3079_v0  ;;  %v3184_v12 = vor.u32 %v3504_v10, %v3183_v9  ;;  %v241_v25 = vperm.slane %v3791_v31, 2  ;;  %v3231_v0 = vld [vmem:[#allocation8 + $0x3b0] sm:$0xf] }
  0xc3   :  { %v921_v23 = vadd.f32 %v920_v18, %v907_v13  ;;  %v3096_v33 = vor.u32 %v3482_v29, %v3095_v28  ;;  %v1120_v36 = vmax.f32 %v947_v17, 0.0  ;;  %1952 = vmatpush.bf16.msra.mxu2 %v2888_v27  ;;  %1965 = vmatpush.bf16.msra.mxu3 %v2960_v39  ;;  %v3407_v13 = vld [vmem:[#allocation8 + $0x54] sm:$0xf]  ;;  %v3522_v17 = vld [vmem:[#allocation8 + $0x3e4] sm:$0xf0] }
  0xc4   :  { %1975 = vmatpush.bf16.msrb.mxu0 %v3056_v30  ;;  %v3425_v18 = vld [vmem:[#allocation8 + $0xe4] sm:$0xf]  ;;  %v3256_v20 = vor.u32 %v3522_v17, %v3255_v15  ;;  %v2793_v27 = vld [vmem:[#allocation8 + $0x48] sm:$0xf0]  ;;  %v3500_v39 = vld [vmem:[#allocation8 + $0x334] sm:$0xf0] }
  0xc5   :  { %v1127_v30 = vmax.f32 %v921_v23, 0.0  ;;  %v2876_v21 = vor.u32 %v3425_v18, %v2873_v19  ;;  %v3502_v23 = vld [vmem:[#allocation8 + $0x344] sm:$0xf0]  ;;  %v3516_v1 = vld [vmem:[#allocation8 + $0x3b4] sm:$0xf0] }
  0xc6   :  { %1989 = vmatpush.bf16.msrb.mxu1 %v3120_v44  ;;  %v934_v32 = vpop.f32.mrf.mxu2  ;;  %v3411_v44 = vld [vmem:[#allocation8 + $0x74] sm:$0xf]  ;;  %v3232_v5 = vor.u32 %v3516_v1, %v3231_v0  ;;  %v3151_v9 = vld [vmem:[#allocation8 + $0x310] sm:$0xf]  ;;  %v3496_v10 = vld [vmem:[#allocation8 + $0x314] sm:$0xf0] }
  0xc7   :  { %v935_v37 = vadd.f32 %v934_v32, %v240_v47  ;;  %v3799_v41 = vpack.c.bf16 %v1127_v30, %v1119_v22  ;;  %v2820_v47 = vor.u32 %v3411_v44, %v2817_v48  ;;  %2001 = vmatpush.bf16.msrb.mxu2 %v3200_v46  ;;  %v3175_v22 = vld [vmem:[#allocation8 + $0x340] sm:$0xf]  ;;  %v3247_v30 = vld [vmem:[#allocation8 + $0x3d0] sm:$0xf]  ;;  %v3520_v32 = vld [vmem:[#allocation8 + $0x3d4] sm:$0xf0] }
  0xc8   :  { %1976 = vmatpush.bf16.msrb.mxu0 %v3048_v38  ;;  %v948_v38 = vpop.f32.mrf.mxu3  ;;  %v3176_v26 = vor.u32 %v3502_v23, %v3175_v22  ;;  %v3248_v35 = vor.u32 %v3520_v32, %v3247_v30  ;;  %v3239_v44 = vld [vmem:[#allocation8 + $0x3c0] sm:$0xf]  ;;  %v3421_v46 = vld [vmem:[#allocation8 + $0xc4] sm:$0xf]  ;;  %v242_v48 = vperm.slane %v3791_v31, 3 }
  0xc9   :  { %v949_v45 = vadd.f32 %v948_v38, %v935_v37  ;;  %1925 = vmatmul.bf16.vlgmr.msra.gmra.mxu0 %v3799_v41  ;;  %v3167_v38 = vld [vmem:[#allocation8 + $0x330] sm:$0xf]  ;;  %v2769_v15 = vld [vmem:[#allocation8 + $0x18] sm:$0xf0]  ;;  %v3223_v17 = vld [vmem:[#allocation8 + $0x3a0] sm:$0xf] }
  0xca   :  { %1990 = vmatpush.bf16.msrb.mxu1 %v3112_v60  ;;  %v3514_v18 = vld [vmem:[#allocation8 + $0x3a4] sm:$0xf0]  ;;  %v2841_v22 = vld [vmem:[#allocation8 + $0xa8] sm:$0xf0]  ;;  %v2929_v0 = vld [vmem:[#allocation8 + $0x158] sm:$0xf0] }
  0xcb   :  { %v1128_v54 = vmax.f32 %v949_v45, 0.0  ;;  %2002 = vmatpush.bf16.msrb.mxu2 %v3192_v61  ;;  %v3518_v45 = vld [vmem:[#allocation8 + $0x3c4] sm:$0xf0]  ;;  %v2761_v32 = vld [vmem:[#allocation8 + $0x8] sm:$0xf0] }
  0xcc   :  { %1977 = vmatpush.bf16.msrb.mxu0 %v3040_v52  ;;  %v2951_v52 = vld [vmem:[#allocation8 + $0x180] sm:$0xf]  ;;  %v3240_v49 = vor.u32 %v3518_v45, %v3239_v44 }
  0xcd   :  { %v2952_v55 = vor.u32 %v3446_v53, %v2951_v52  ;;  %v3802_v60 = vpack.c.bf16 %v1128_v54, %v1120_v36  ;;  %v2865_v36 = vld [vmem:[#allocation8 + $0xd8] sm:$0xf0]  ;;  %v3498_v52 = vld [vmem:[#allocation8 + $0x324] sm:$0xf0]  ;;  %v3401_v53 = vld [vmem:[#allocation8 + $0x24] sm:$0xf] }
  0xce   :  { %1991 = vmatpush.bf16.msrb.mxu1 %v3104_v14  ;;  %v2801_v14 = vld [vmem:[#allocation8 + $0x58] sm:$0xf0]  ;;  %v2780_v62 = vor.u32 %v3401_v53, %v2777_v58  ;;  %v2825_v53 = vld [vmem:[#allocation8 + $0x88] sm:$0xf0]  ;;  %v3459_v58 = vld [vmem:[#allocation8 + $0x1f4] sm:$0xf] }
  0xcf   :  { %1966 = vmatpush.bf16.msra.mxu3 %v2952_v55  ;;  %1939 = vmatmul.bf16.vlgmr.msra.gmra.mxu1 %v3802_v60  ;;  %v2804_v16 = vor.u32 %v3407_v13, %v2801_v14  ;;  %v3152_v14 = vor.u32 %v3496_v10, %v3151_v9  ;;  %v3455_v9 = vld [vmem:[#allocation8 + $0x1d4] sm:$0xf]  ;;  %v2993_v10 = vld [vmem:[#allocation8 + $0x1d8] sm:$0xf0] }
  0xd0   :  { %1978 = vmatpush.bf16.msrb.mxu0 %v3032_v6  ;;  %v3427_v6 = vld [vmem:[#allocation8 + $0xf4] sm:$0xf]  ;;  %2003 = vmatpush.bf16.msrb.mxu2 %v3184_v12 }
  0xd1   :  { %v2884_v11 = vor.u32 %v3427_v6, %v2881_v8  ;;  %v2849_v6 = vld [vmem:[#allocation8 + $0xb8] sm:$0xf0] }
  0xd2   :  { %1992 = vmatpush.bf16.msrb.mxu1 %v3096_v33  ;;  %v3423_v33 = vld [vmem:[#allocation8 + $0xd4] sm:$0xf] }
  0xd3   :  { %2015 = vmatpush.bf16.msrb.mxu3 %v3264_v7  ;;  %v2868_v37 = vor.u32 %v3423_v33, %v2865_v36  ;;  %v3443_v33 = vld [vmem:[#allocation8 + $0x174] sm:$0xf] }
  0xd4   :  { %1979 = vmatpush.bf16.msrb.mxu0 %v3024_v24  ;;  %v3405_v24 = vld [vmem:[#allocation8 + $0x44] sm:$0xf]  ;;  %2004 = vmatpush.bf16.msrb.mxu2 %v3176_v26  ;;  %v3494_v26 = vld [vmem:[#allocation8 + $0x304] sm:$0xf0] }
  0xd5   :  { %v2796_v29 = vor.u32 %v3405_v24, %v2793_v27  ;;  %v3397_v27 = vld [vmem:[#allocation8 + $0x4] sm:$0xf] }
  0xd6   :  { %1993 = vmatpush.bf16.msrb.mxu1 %v3088_v51  ;;  %v3159_v51 = vld [vmem:[#allocation8 + $0x320] sm:$0xf] }
  0xd7   :  { %2016 = vmatpush.bf16.msrb.mxu3 %v3256_v20  ;;  %v3160_v57 = vor.u32 %v3498_v52, %v3159_v51  ;;  %v3224_v20 = vor.u32 %v3514_v18, %v3223_v17  ;;  %v3510_v51 = vld [vmem:[#allocation8 + $0x384] sm:$0xf0]  ;;  %v3413_v52 = vld [vmem:[#allocation8 + $0x84] sm:$0xf] }
  0xd8   :  { %1980 = vmatpush.bf16.msrb.mxu0 %v3016_v42  ;;  %v960_v28 = vpop.f32.mrf.mxu0  ;;  %v3168_v42 = vor.u32 %v3500_v39, %v3167_v38  ;;  %v3215_v39 = vld [vmem:[#allocation8 + $0x390] sm:$0xf]  ;;  %v3453_v18 = vld [vmem:[#allocation8 + $0x1c4] sm:$0xf] }
  0xd9   :  { %v961_v56 = vadd.f32 %v960_v28, %v241_v25  ;;  %v3216_v44 = vor.u32 %v3512_v40, %v3215_v39  ;;  %v3475_v39 = vld [vmem:[#allocation8 + $0x274] sm:$0xf]  ;;  %v3073_v40 = vld [vmem:[#allocation8 + $0x278] sm:$0xf0] }
  0xda   :  { %1994 = vmatpush.bf16.msrb.mxu1 %v3080_v3  ;;  %v974_v34 = vpop.f32.mrf.mxu1  ;;  %2005 = vmatpush.bf16.msrb.mxu2 %v3168_v42  ;;  %v2833_v42 = vld [vmem:[#allocation8 + $0x98] sm:$0xf0] }
  0xdb   :  { %2017 = vmatpush.bf16.msrb.mxu3 %v3248_v35  ;;  %v975_v54 = vadd.f32 %v974_v34, %v961_v56  ;;  %v2945_v34 = vld [vmem:[#allocation8 + $0x178] sm:$0xf0]  ;;  %v3415_v56 = vld [vmem:[#allocation8 + $0x94] sm:$0xf] }
  0xdc   :  { %2029 = vmatpush.bf16.msra.mxu0 %v2820_v47  ;;  %v2860_v47 = vor.u32 %v3421_v46, %v2857_v50  ;;  %v2948_v38 = vor.u32 %v3443_v33, %v2945_v34  ;;  %v2836_v45 = vor.u32 %v3415_v56, %v2833_v42  ;;  %v3441_v46 = vld [vmem:[#allocation8 + $0x164] sm:$0xf] }
  0xdd   :  { %v1121_v12 = vmax.f32 %v975_v54, 0.0 }
  0xde   :  { %2043 = vmatpush.bf16.msra.mxu1 %v2884_v11  ;;  %v988_v55 = vpop.f32.mrf.mxu2  ;;  %2006 = vmatpush.bf16.msrb.mxu2 %v3160_v57  ;;  %v3399_v11 = vld [vmem:[#allocation8 + $0x14] sm:$0xf]  ;;  %v2828_v57 = vor.u32 %v3413_v52, %v2825_v53 }
  0xdf   :  { %2018 = vmatpush.bf16.msrb.mxu3 %v3240_v49  ;;  %v989_v7 = vadd.f32 %v988_v55, %v242_v48  ;;  %v2937_v49 = vld [vmem:[#allocation8 + $0x168] sm:$0xf0] }
  0xe0   :  { %2030 = vmatpush.bf16.msra.mxu0 %v2812_v2  ;;  %v962_v59 = vpop.f32.mrf.mxu0  ;;  %v1002_v61 = vpop.f32.mrf.mxu3  ;;  %v3419_v2 = vld [vmem:[#allocation8 + $0xb4] sm:$0xf]  ;;  %v2940_v50 = vor.u32 %v3441_v46, %v2937_v49  ;;  %v3429_v49 = vld [vmem:[#allocation8 + $0x104] sm:$0xf] }
  0xe1   :  { %v963_v3 = vadd.f32 %v962_v59, %v241_v25  ;;  %v2852_v8 = vor.u32 %v3419_v2, %v2849_v6  ;;  %v1003_v23 = vadd.f32 %v1002_v61, %v989_v7  ;;  %v3143_v25 = vld [vmem:[#allocation8 + $0x300] sm:$0xf]  ;;  %v3009_v59 = vld [vmem:[#allocation8 + $0x1f8] sm:$0xf0]  ;;  %v3457_v2 = vld [vmem:[#allocation8 + $0x1e4] sm:$0xf] }
  0xe2   :  { %2044 = vmatpush.bf16.msra.mxu1 %v2876_v21  ;;  %v976_v4 = vpop.f32.mrf.mxu1  ;;  %2007 = vmatpush.bf16.msrb.mxu2 %v3152_v14  ;;  %v3417_v21 = vld [vmem:[#allocation8 + $0xa4] sm:$0xf]  ;;  %v3144_v30 = vor.u32 %v3494_v26, %v3143_v25  ;;  %v3012_v61 = vor.u32 %v3459_v58, %v3009_v59  ;;  %v2921_v6 = vld [vmem:[#allocation8 + $0x148] sm:$0xf0]  ;;  %v3435_v14 = vld [vmem:[#allocation8 + $0x134] sm:$0xf] }
  0xe3   :  { %v977_v13 = vadd.f32 %v976_v4, %v963_v3  ;;  %2019 = vmatpush.bf16.msrb.mxu3 %v3232_v5  ;;  %v2844_v24 = vor.u32 %v3417_v21, %v2841_v22  ;;  %v1122_v63 = vmax.f32 %v1003_v23, 0.0  ;;  %v3001_v3 = vld [vmem:[#allocation8 + $0x1e8] sm:$0xf0]  ;;  %v3437_v5 = vld [vmem:[#allocation8 + $0x144] sm:$0xf]  ;;  %v244_v23 = vperm.slane %v3791_v31, 5 }
  0xe4   :  { %2031 = vmatpush.bf16.msra.mxu0 %v2804_v16  ;;  %v2772_v16 = vor.u32 %v3399_v11, %v2769_v15  ;;  %v3004_v4 = vor.u32 %v3457_v2, %v3001_v3  ;;  %v2924_v7 = vor.u32 %v3437_v5, %v2921_v6  ;;  %v2913_v15 = vld [vmem:[#allocation8 + $0x138] sm:$0xf0]  ;;  %v3433_v21 = vld [vmem:[#allocation8 + $0x124] sm:$0xf]  ;;  %v2905_v22 = vld [vmem:[#allocation8 + $0x128] sm:$0xf0] }
  0xe5   :  { %v1129_v19 = vmax.f32 %v977_v13, 0.0  ;;  %v3447_v58 = vld [vmem:[#allocation8 + $0x194] sm:$0xf]  ;;  %v2961_v59 = vld [vmem:[#allocation8 + $0x198] sm:$0xf0] }
  0xe6   :  { %2045 = vmatpush.bf16.msra.mxu1 %v2868_v37  ;;  %v2764_v37 = vor.u32 %v3397_v27, %v2761_v32  ;;  %2008 = vmatpush.bf16.msrb.mxu2 %v3144_v30  ;;  %v3451_v27 = vld [vmem:[#allocation8 + $0x1b4] sm:$0xf]  ;;  %v3137_v5 = vld [vmem:[#allocation8 + $0x2f8] sm:$0xf0] }
  0xe7   :  { %v3807_v28 = vpack.c.bf16 %v1129_v19, %v1121_v12  ;;  %2020 = vmatpush.bf16.msrb.mxu3 %v3224_v20  ;;  %v2996_v12 = vor.u32 %v3455_v9, %v2993_v10  ;;  %v2985_v19 = vld [vmem:[#allocation8 + $0x1c8] sm:$0xf0]  ;;  %v3471_v6 = vld [vmem:[#allocation8 + $0x254] sm:$0xf] }
  0xe8   :  { %2032 = vmatpush.bf16.msra.mxu0 %v2796_v29  ;;  %v990_v29 = vpop.f32.mrf.mxu2  ;;  %v1004_v36 = vpop.f32.mrf.mxu3  ;;  %v2988_v20 = vor.u32 %v3453_v18, %v2985_v19  ;;  %v2953_v9 = vld [vmem:[#allocation8 + $0x188] sm:$0xf0] }
  0xe9   :  { %v991_v35 = vadd.f32 %v990_v29, %v242_v48  ;;  %1953 = vmatmul.bf16.vlgmr.msra.gmra.mxu2 %v3807_v28  ;;  %v2977_v29 = vld [vmem:[#allocation8 + $0x1b8] sm:$0xf0]  ;;  %v3049_v18 = vld [vmem:[#allocation8 + $0x248] sm:$0xf0] }
  0xea   :  { %2046 = vmatpush.bf16.msra.mxu1 %v2860_v47  ;;  %2057 = vmatpush.bf16.msra.mxu2 %v2948_v38  ;;  %v3207_v47 = vld [vmem:[#allocation8 + $0x380] sm:$0xf]  ;;  %v2980_v33 = vor.u32 %v3451_v27, %v2977_v29  ;;  %v245_v27 = vperm.slane %v3791_v31, 6 }
  0xeb   :  { %2021 = vmatpush.bf16.msrb.mxu3 %v3216_v44  ;;  %v3208_v55 = vor.u32 %v3510_v51, %v3207_v47  ;;  %v2969_v44 = vld [vmem:[#allocation8 + $0x1a8] sm:$0xf0]  ;;  %v3076_v47 = vor.u32 %v3475_v39, %v3073_v40  ;;  %v3473_v51 = vld [vmem:[#allocation8 + $0x264] sm:$0xf]  ;;  %v3483_v39 = vld [vmem:[#allocation8 + $0x2b4] sm:$0xf] }
  0xec   :  { %2033 = vmatpush.bf16.msra.mxu0 %v2788_v43  ;;  %v1005_v43 = vadd.f32 %v1004_v36, %v991_v35  ;;  %v3431_v36 = vld [vmem:[#allocation8 + $0x114] sm:$0xf]  ;;  %v3105_v40 = vld [vmem:[#allocation8 + $0x2b8] sm:$0xf0] }
  0xee   :  { %2047 = vmatpush.bf16.msra.mxu1 %v2852_v8  ;;  %v1130_v48 = vmax.f32 %v1005_v43, 0.0  ;;  %2058 = vmatpush.bf16.msra.mxu2 %v2940_v50  ;;  %v243_v8 = vperm.slane %v3791_v31, 4  ;;  %v3449_v43 = vld [vmem:[#allocation8 + $0x1a4] sm:$0xf] }
  0xef   :  { %2022 = vmatpush.bf16.msrb.mxu3 %v3208_v55 }
  0xf0   :  { %2034 = vmatpush.bf16.msra.mxu0 %v2780_v62  ;;  %v3810_v54 = vpack.c.bf16 %v1130_v48, %v1122_v63  ;;  %v3439_v62 = vld [vmem:[#allocation8 + $0x154] sm:$0xf]  ;;  %v2889_v48 = vld [vmem:[#allocation8 + $0x108] sm:$0xf0] }
  0xf1   :  { %v2932_v1 = vor.u32 %v3439_v62, %v2929_v0  ;;  %v2892_v52 = vor.u32 %v3429_v49, %v2889_v48  ;;  %v2964_v0 = vor.u32 %v3447_v58, %v2961_v59  ;;  %v3507_v58 = vld [vmem:[#allocation8 + $0x374] sm:$0xf]  ;;  %v3201_v59 = vld [vmem:[#allocation8 + $0x378] sm:$0xf0] }
  0xf2   :  { %2048 = vmatpush.bf16.msra.mxu1 %v2844_v24  ;;  %1967 = vmatmul.bf16.vlgmr.msra.gmra.mxu3 %v3810_v54  ;;  %v2908_v24 = vor.u32 %v3433_v21, %v2905_v22  ;;  %v3487_v21 = vld [vmem:[#allocation8 + $0x2d4] sm:$0xf]  ;;  %v3121_v22 = vld [vmem:[#allocation8 + $0x2d8] sm:$0xf0] }
  0xf3   :  { %2071 = vmatpush.bf16.msra.mxu3 %v3012_v61  ;;  %2059 = vmatpush.bf16.msra.mxu2 %v2932_v1  ;;  %v3491_v1 = vld [vmem:[#allocation8 + $0x2f4] sm:$0xf] }
  0xf4   :  { %2035 = vmatpush.bf16.msra.mxu0 %v2772_v16  ;;  %v2916_v16 = vor.u32 %v3435_v14, %v2913_v15  ;;  %v3489_v15 = vld [vmem:[#allocation8 + $0x2e4] sm:$0xf] }
  0xf6   :  { %2049 = vmatpush.bf16.msra.mxu1 %v2836_v45  ;;  %v2972_v45 = vor.u32 %v3449_v43, %v2969_v44  ;;  %v246_v43 = vperm.slane %v3791_v31, 7 }
  0xf7   :  { %2072 = vmatpush.bf16.msra.mxu3 %v3004_v4  ;;  %2060 = vmatpush.bf16.msra.mxu2 %v2924_v7  ;;  %v3057_v7 = vld [vmem:[#allocation8 + $0x258] sm:$0xf0] }
  0xf8   :  { %2036 = vmatpush.bf16.msra.mxu0 %v2764_v37  ;;  %v1016_v11 = vpop.f32.mrf.mxu0  ;;  %v2897_v37 = vld [vmem:[#allocation8 + $0x118] sm:$0xf0]  ;;  %v3060_v14 = vor.u32 %v3471_v6, %v3057_v7  ;;  %v3505_v7 = vld [vmem:[#allocation8 + $0x364] sm:$0xf] }
  0xf9   :  { %v1017_v17 = vadd.f32 %v1016_v11, %v243_v8  ;;  %v2900_v56 = vor.u32 %v3431_v36, %v2897_v37 }
  0xfa   :  { %2050 = vmatpush.bf16.msra.mxu1 %v2828_v57  ;;  %v1030_v13 = vpop.f32.mrf.mxu1  ;;  %v3065_v57 = vld [vmem:[#allocation8 + $0x268] sm:$0xf0] }
  0xfb   :  { %2073 = vmatpush.bf16.msra.mxu3 %v2996_v12  ;;  %2061 = vmatpush.bf16.msra.mxu2 %v2916_v16  ;;  %v1031_v25 = vadd.f32 %v1030_v13, %v1017_v17  ;;  %v3068_v4 = vor.u32 %v3473_v51, %v3065_v57  ;;  %v3140_v12 = vor.u32 %v3491_v1, %v3137_v5  ;;  %v3129_v16 = vld [vmem:[#allocation8 + $0x2e8] sm:$0xf0]  ;;  %v3469_v17 = vld [vmem:[#allocation8 + $0x244] sm:$0xf] }
  0xfc   :  { %v3132_v19 = vor.u32 %v3489_v15, %v3129_v16 }
  0xfd   :  { %v1123_v42 = vmax.f32 %v1031_v25, 0.0 }
  0xfe   :  { %v1044_v26 = vpop.f32.mrf.mxu2 }
  0xff   :  { %2074 = vmatpush.bf16.msra.mxu3 %v2988_v20  ;;  %2062 = vmatpush.bf16.msra.mxu2 %v2908_v24  ;;  %v1045_v38 = vadd.f32 %v1044_v26, %v244_v23  ;;  %v3052_v20 = vor.u32 %v3469_v17, %v3049_v18  ;;  %v3041_v24 = vld [vmem:[#allocation8 + $0x238] sm:$0xf0]  ;;  %v3124_v26 = vor.u32 %v3487_v21, %v3121_v22  ;;  %v3523_v17 = vld [vmem:[#allocation8 + $0x3f4] sm:$0xf] }
 0x100   :  { %v1018_v30 = vpop.f32.mrf.mxu0  ;;  %v1058_v32 = vpop.f32.mrf.mxu3  ;;  %v3265_v18 = vld [vmem:[#allocation8 + $0x3f8] sm:$0xf0] }
 0x101   :  { %v1019_v34 = vadd.f32 %v1018_v30, %v243_v8  ;;  %v1059_v50 = vadd.f32 %v1058_v32, %v1045_v38  ;;  %v3445_v8 = vld [vmem:[#allocation8 + $0x184] sm:$0xf] }
 0x102   :  { %v1032_v35 = vpop.f32.mrf.mxu1  ;;  %v2956_v11 = vor.u32 %v3445_v8, %v2953_v9  ;;  %v3485_v32 = vld [vmem:[#allocation8 + $0x2c4] sm:$0xf]  ;;  %v3193_v8 = vld [vmem:[#allocation8 + $0x368] sm:$0xf0] }
 0x103   :  { %v1033_v63 = vadd.f32 %v1032_v35, %v1019_v34  ;;  %2075 = vmatpush.bf16.msra.mxu3 %v2980_v33  ;;  %2063 = vmatpush.bf16.msra.mxu2 %v2900_v56  ;;  %v1124_v2 = vmax.f32 %v1059_v50, 0.0  ;;  %v3113_v33 = vld [vmem:[#allocation8 + $0x2c8] sm:$0xf0]  ;;  %v3465_v34 = vld [vmem:[#allocation8 + $0x224] sm:$0xf]  ;;  %v3196_v16 = vor.u32 %v3505_v7, %v3193_v8 }
 0x104   :  { %v3033_v35 = vld [vmem:[#allocation8 + $0x228] sm:$0xf0]  ;;  %v3116_v36 = vor.u32 %v3485_v32, %v3113_v33  ;;  %v3463_v56 = vld [vmem:[#allocation8 + $0x214] sm:$0xf] }
 0x105   :  { %v1131_v46 = vmax.f32 %v1033_v63, 0.0  ;;  %v3036_v38 = vor.u32 %v3465_v34, %v3033_v35  ;;  %v3177_v32 = vld [vmem:[#allocation8 + $0x348] sm:$0xf0]  ;;  %v3519_v35 = vld [vmem:[#allocation8 + $0x3d4] sm:$0xf] }
 0x106   :  { %v1046_v55 = vpop.f32.mrf.mxu2 }
 0x107   :  { %v3815_v53 = vpack.c.bf16 %v1131_v46, %v1123_v42  ;;  %v1047_v61 = vadd.f32 %v1046_v55, %v244_v23  ;;  %2076 = vmatpush.bf16.msra.mxu3 %v2972_v45  ;;  %2064 = vmatpush.bf16.msra.mxu2 %v2892_v52  ;;  %v3467_v23 = vld [vmem:[#allocation8 + $0x234] sm:$0xf]  ;;  %v3025_v42 = vld [vmem:[#allocation8 + $0x218] sm:$0xf0]  ;;  %v3108_v46 = vor.u32 %v3483_v39, %v3105_v40  ;;  %v3461_v52 = vld [vmem:[#allocation8 + $0x204] sm:$0xf] }
 0x108   :  { %v1060_v62 = vpop.f32.mrf.mxu3  ;;  %v3044_v30 = vor.u32 %v3467_v23, %v3041_v24  ;;  %v3028_v50 = vor.u32 %v3463_v56, %v3025_v42  ;;  %v3017_v55 = vld [vmem:[#allocation8 + $0x208] sm:$0xf0]  ;;  %v3268_v24 = vor.u32 %v3523_v17, %v3265_v18  ;;  %v3517_v40 = vld [vmem:[#allocation8 + $0x3c4] sm:$0xf] }
 0x109   :  { %1981 = vmatmul.bf16.vlgmr.msrb.gmra.mxu0 %v3815_v53  ;;  %v1061_v3 = vadd.f32 %v1060_v62, %v1047_v61  ;;  %v3020_v1 = vor.u32 %v3461_v52, %v3017_v55  ;;  %v3241_v56 = vld [vmem:[#allocation8 + $0x3c8] sm:$0xf0]  ;;  %v3497_v42 = vld [vmem:[#allocation8 + $0x324] sm:$0xf] }
 0x10a   :  { %2085 = vmatpush.bf16.msrb.mxu0 %v3076_v47  ;;  %v3097_v47 = vld [vmem:[#allocation8 + $0x2a8] sm:$0xf0] }
 0x10b   :  { %v1132_v10 = vmax.f32 %v1061_v3, 0.0  ;;  %2077 = vmatpush.bf16.msra.mxu3 %v2964_v0  ;;  %v3089_v3 = vld [vmem:[#allocation8 + $0x298] sm:$0xf0]  ;;  %v3145_v52 = vld [vmem:[#allocation8 + $0x308] sm:$0xf0] }
 0x10d   :  { %v3818_v13 = vpack.c.bf16 %v1132_v10, %v1124_v2  ;;  %v3479_v2 = vld [vmem:[#allocation8 + $0x294] sm:$0xf] }
 0x10e   :  { %2086 = vmatpush.bf16.msrb.mxu0 %v3068_v4  ;;  %v3204_v4 = vor.u32 %v3507_v58, %v3201_v59  ;;  %v3217_v58 = vld [vmem:[#allocation8 + $0x398] sm:$0xf0] }
 0x10f   :  { %1995 = vmatmul.bf16.vlgmr.msrb.gmra.mxu1 %v3818_v13  ;;  %2078 = vmatpush.bf16.msra.mxu3 %v2956_v11 }
 0x110   :  { %2099 = vmatpush.bf16.msrb.mxu1 %v3140_v12  ;;  %v3477_v12 = vld [vmem:[#allocation8 + $0x284] sm:$0xf] }
 0x112   :  { %2087 = vmatpush.bf16.msrb.mxu0 %v3060_v14  ;;  %v3081_v14 = vld [vmem:[#allocation8 + $0x288] sm:$0xf0] }
 0x113   :  { %v3084_v23 = vor.u32 %v3477_v12, %v3081_v14 }
 0x114   :  { %2100 = vmatpush.bf16.msrb.mxu1 %v3132_v19  ;;  %v3503_v19 = vld [vmem:[#allocation8 + $0x354] sm:$0xf] }
 0x116   :  { %2088 = vmatpush.bf16.msrb.mxu0 %v3052_v20  ;;  %v3185_v20 = vld [vmem:[#allocation8 + $0x358] sm:$0xf0] }
 0x118   :  { %v1072_v25 = vpop.f32.mrf.mxu0  ;;  %2101 = vmatpush.bf16.msrb.mxu1 %v3124_v26  ;;  %v3188_v26 = vor.u32 %v3503_v19, %v3185_v20 }
 0x119   :  { %2037 = vmatmul.bf16.vlgmr.msra.gmra.mxu0 %v3799_v41  ;;  %v1073_v37 = vadd.f32 %v1072_v25, %v245_v27  ;;  %v3481_v41 = vld [vmem:[#allocation8 + $0x2a4] sm:$0xf] }
 0x11a   :  { %v1086_v29 = vpop.f32.mrf.mxu1  ;;  %2089 = vmatpush.bf16.msrb.mxu0 %v3044_v30  ;;  %v3100_v31 = vor.u32 %v3481_v41, %v3097_v47  ;;  %v3501_v30 = vld [vmem:[#allocation8 + $0x344] sm:$0xf]  ;;  %v3225_v47 = vld [vmem:[#allocation8 + $0x3a8] sm:$0xf0] }
 0x11b   :  { %v1087_v49 = vadd.f32 %v1086_v29, %v1073_v37  ;;  %v3257_v29 = vld [vmem:[#allocation8 + $0x3e8] sm:$0xf0]  ;;  %v3180_v34 = vor.u32 %v3501_v30, %v3177_v32  ;;  %v3169_v37 = vld [vmem:[#allocation8 + $0x338] sm:$0xf0]  ;;  %v3513_v41 = vld [vmem:[#allocation8 + $0x3a4] sm:$0xf] }
 0x11c   :  { %2102 = vmatpush.bf16.msrb.mxu1 %v3116_v36  ;;  %v3249_v36 = vld [vmem:[#allocation8 + $0x3d8] sm:$0xf0]  ;;  %v3228_v55 = vor.u32 %v3513_v41, %v3225_v47 }
 0x11d   :  { %v1125_v62 = vmax.f32 %v1087_v49, 0.0  ;;  %v3495_v49 = vld [vmem:[#allocation8 + $0x314] sm:$0xf] }
 0x11e   :  { %v1100_v63 = vpop.f32.mrf.mxu2  ;;  %2090 = vmatpush.bf16.msrb.mxu0 %v3036_v38  ;;  %v3252_v38 = vor.u32 %v3519_v35, %v3249_v36 }
 0x11f   :  { %2051 = vmatmul.bf16.vlgmr.msra.gmra.mxu1 %v3802_v60  ;;  %v1101_v61 = vadd.f32 %v1100_v63, %v246_v43  ;;  %v3092_v60 = vor.u32 %v3479_v2, %v3089_v3  ;;  %v3161_v63 = vld [vmem:[#allocation8 + $0x328] sm:$0xf0] }
 0x120   :  { %v1114_v44 = vpop.f32.mrf.mxu3  ;;  %v1074_v45 = vpop.f32.mrf.mxu0  ;;  %2103 = vmatpush.bf16.msrb.mxu1 %v3108_v46  ;;  %v3233_v46 = vld [vmem:[#allocation8 + $0x3b8] sm:$0xf0] }
 0x121   :  { %v1075_v48 = vadd.f32 %v1074_v45, %v245_v27  ;;  %v1115_v9 = vadd.f32 %v1114_v44, %v1101_v61  ;;  %v3521_v27 = vld [vmem:[#allocation8 + $0x3e4] sm:$0xf]  ;;  %v3164_v44 = vor.u32 %v3497_v42, %v3161_v63  ;;  %v3515_v45 = vld [vmem:[#allocation8 + $0x3b4] sm:$0xf] }
 0x122   :  { %v1088_v51 = vpop.f32.mrf.mxu1  ;;  %2091 = vmatpush.bf16.msrb.mxu0 %v3028_v50  ;;  %v3260_v33 = vor.u32 %v3521_v27, %v3257_v29  ;;  %v3509_v61 = vld [vmem:[#allocation8 + $0x384] sm:$0xf] }
 0x123   :  { %v1089_v57 = vadd.f32 %v1088_v51, %v1075_v48  ;;  %v1126_v21 = vmax.f32 %v1115_v9, 0.0  ;;  %v3236_v48 = vor.u32 %v3515_v45, %v3233_v46  ;;  %v3493_v51 = vld [vmem:[#allocation8 + $0x304] sm:$0xf] }
 0x124   :  { %2104 = vmatpush.bf16.msrb.mxu1 %v3100_v31  ;;  %v3209_v31 = vld [vmem:[#allocation8 + $0x388] sm:$0xf0] }
 0x125   :  { %v1133_v0 = vmax.f32 %v1089_v57, 0.0  ;;  %v3511_v57 = vld [vmem:[#allocation8 + $0x394] sm:$0xf] }
 0x126   :  { %v1102_v6 = vpop.f32.mrf.mxu2  ;;  %2092 = vmatpush.bf16.msrb.mxu0 %v3020_v1  ;;  %v3220_v59 = vor.u32 %v3511_v57, %v3217_v58  ;;  %v3544_v58 = vld [vmem:[#allocation2] sm:$0xff] }
 0x127   :  { %v3825_v5 = vpack.c.bf16 %v1133_v0, %v1125_v62  ;;  %v1103_v10 = vadd.f32 %v1102_v6, %v246_v43  ;;  %v3244_v43 = vor.u32 %v3517_v40, %v3241_v56  ;;  %v3212_v62 = vor.u32 %v3509_v61, %v3209_v31  ;;  %v3545_v61 = vld [vmem:[#allocation2 + $0x8] sm:$0xff] }
 0x128   :  { %v1116_v11 = vpop.f32.mrf.mxu3  ;;  %2105 = vmatpush.bf16.msrb.mxu1 %v3092_v60 }
 0x129   :  { %2009 = vmatmul.bf16.vlgmr.msrb.gmra.mxu2 %v3825_v5  ;;  %v1117_v15 = vadd.f32 %v1116_v11, %v1103_v10  ;;  %2093 = vmatmul.bf16.vlgmr.msrb.gmra.mxu0 %v3815_v53  ;;  %v3499_v53 = vld [vmem:[#allocation8 + $0x334] sm:$0xf] }
 0x12a   :  { %2113 = vmatpush.bf16.msrb.mxu2 %v3204_v4  ;;  %v3172_v39 = vor.u32 %v3499_v53, %v3169_v37 }
 0x12b   :  { %v1134_v22 = vmax.f32 %v1117_v15, 0.0 }
 0x12c   :  { %2106 = vmatpush.bf16.msrb.mxu1 %v3084_v23 }
 0x12d   :  { %v1142_v25 = vpack.c.bf16 %v1134_v22, %v1126_v21 }
 0x12e   :  { %2114 = vmatpush.bf16.msrb.mxu2 %v3196_v16  ;;  %v1271_v16 = vld [vmem:[%s3849_s4] sm:$0x3] }
 0x12f   :  { %2023 = vmatmul.bf16.vlgmr.msrb.gmra.mxu3 %v1142_v25  ;;  %2107 = vmatmul.bf16.vlgmr.msrb.gmra.mxu1 %v3818_v13  ;;  %v3153_v13 = vld [vmem:[#allocation8 + $0x318] sm:$0xf0]  ;;  %v1273_v19 = vperm.slane %v1271_v16, 0  ;;  %v1274_v20 = vperm.slane %v1271_v16, 1 }
 0x130   :  { %2127 = vmatpush.bf16.msrb.mxu3 %v3268_v24  ;;  %v3156_v50 = vor.u32 %v3495_v49, %v3153_v13 }
 0x132   :  { %2115 = vmatpush.bf16.msrb.mxu2 %v3188_v26 }
 0x134   :  { %2128 = vmatpush.bf16.msrb.mxu3 %v3260_v33 }
 0x136   :  { %2116 = vmatpush.bf16.msrb.mxu2 %v3180_v34 }
 0x138   :  { %2129 = vmatpush.bf16.msrb.mxu3 %v3252_v38 }
 0x139   :  { %2065 = vmatmul.bf16.vlgmr.msra.gmra.mxu2 %v3807_v28  ;;  %v3148_v28 = vor.u32 %v3493_v51, %v3145_v52 }
 0x13a   :  { %2117 = vmatpush.bf16.msrb.mxu2 %v3172_v39 }
 0x13c   :  { %2130 = vmatpush.bf16.msrb.mxu3 %v3244_v43 }
 0x13e   :  { %2118 = vmatpush.bf16.msrb.mxu2 %v3164_v44 }
 0x13f   :  { %2079 = vmatmul.bf16.vlgmr.msra.gmra.mxu3 %v3810_v54 }
 0x140   :  { %2131 = vmatpush.bf16.msrb.mxu3 %v3236_v48 }
 0x142   :  { %2119 = vmatpush.bf16.msrb.mxu2 %v3156_v50 }
 0x144   :  { %2132 = vmatpush.bf16.msrb.mxu3 %v3228_v55 }
 0x146   :  { %2120 = vmatpush.bf16.msrb.mxu2 %v3148_v28  ;;  %v1926_v0 = vpop.f32.mrf.mxu0 }
 0x147   :  { %v1927_v22 = vadd.f32 %v1926_v0, %v1273_v19 }
 0x148   :  { %2133 = vmatpush.bf16.msrb.mxu3 %v3220_v59 }
 0x149   :  { %2121 = vmatmul.bf16.vlgmr.msrb.gmra.mxu2 %v3825_v5 }
 0x14c   :  { %2134 = vmatpush.bf16.msrb.mxu3 %v3212_v62  ;;  %v1940_v1 = vpop.f32.mrf.mxu1 }
 0x14d   :  { %v1941_v29 = vadd.f32 %v1940_v1, %v1927_v22 }
 0x14e   :  { %v1928_v54 = vpop.f32.mrf.mxu0 }
 0x14f   :  { %2135 = vmatmul.bf16.vlgmr.msrb.gmra.mxu3 %v1142_v25  ;;  %v1929_v35 = vadd.f32 %v1928_v54, %v1273_v19 }
 0x154   :  { %v1942_v3 = vpop.f32.mrf.mxu1 }
 0x155   :  { %v1943_v63 = vadd.f32 %v1942_v3, %v1929_v35 }
 0x16c   :  { %v1954_v2 = vpop.f32.mrf.mxu2 }
 0x16d   :  { %v1955_v32 = vadd.f32 %v1954_v2, %v1941_v29 }
 0x174   :  { %v1956_v7 = vpop.f32.mrf.mxu2 }
 0x175   :  { %v1968_v4 = vpop.f32.mrf.mxu3  ;;  %v1957_v45 = vadd.f32 %v1956_v7, %v1943_v63 }
 0x176   :  { %v1969_v36 = vadd.f32 %v1968_v4, %v1955_v32 }
 0x17d   :  { %v1970_v9 = vpop.f32.mrf.mxu3 }
 0x17e   :  { %v1971_v48 = vadd.f32 %v1970_v9, %v1957_v45 }
 0x186   :  { %v1982_v6 = vpop.f32.mrf.mxu0 }
 0x187   :  { %v1983_v38 = vadd.f32 %v1982_v6, %v1969_v36 }
 0x18c   :  { %v1996_v8 = vpop.f32.mrf.mxu1 }
 0x18d   :  { %v1997_v43 = vadd.f32 %v1996_v8, %v1983_v38  ;;  %v3546_v8 = vld [vmem:[#allocation2 + $0x10] sm:$0xff] }
 0x18e   :  { %v1984_v10 = vpop.f32.mrf.mxu0 }
 0x18f   :  { %v1985_v52 = vadd.f32 %v1984_v10, %v1971_v48  ;;  %v3547_v10 = vld [vmem:[#allocation2 + $0x18] sm:$0xff] }
 0x194   :  { %v1998_v11 = vpop.f32.mrf.mxu1 }
 0x195   :  { %v1999_v57 = vadd.f32 %v1998_v11, %v1985_v52  ;;  %v3711_v11 = vmov 256.0  }
 0x196   :  { %v2038_v15 = vpop.f32.mrf.mxu0  ;;  %3538 = vrcp.f32 %v3711_v11 }
 0x197   :  { %v2039_v23 = vadd.f32 %v2038_v15, %v1274_v20 }
 0x19c   :  { %v2052_v5 = vpop.f32.mrf.mxu1  ;;  %v3539_v15 = vpop.eup %3538 }
 0x19d   :  { %v2053_v26 = vadd.f32 %v2052_v5, %v2039_v23  ;;  %v2152_v5 = vmul.f32 256.0, %v3539_v15  ;;  %vm2156_vm0 = vweird.f32 %v3539_v15 }
 0x19e   :  { %v2040_v21 = vpop.f32.mrf.mxu0 }
 0x19f   :  { %v2041_v53 = vadd.f32 %v2040_v21, %v1274_v20  ;;  %v2153_v16 = vsub.f32 1.0, %v2152_v5 }
 0x1a4   :  { %v2054_v24 = vpop.f32.mrf.mxu1 }
 0x1a5   :  { %v2055_v39 = vadd.f32 %v2054_v24, %v2041_v53 }
 0x1a6   :  { %v2094_v34 = vpop.f32.mrf.mxu0 }
 0x1ac   :  { %v2010_v60 = vpop.f32.mrf.mxu2  ;;  %v2108_v56 = vpop.f32.mrf.mxu1 }
 0x1ad   :  { %v2011_v46 = vadd.f32 %v2010_v60, %v1997_v43  ;;  %v101_v43 = vld [vmem:[%s3850_s5] sm:$0x3]  ;;  %s3712_s5 = smov [#allocation11]  }
 0x1ae   :  { %v2096_v47 = vpop.f32.mrf.mxu0  ;;  %v2203_v48 = vperm.slane %v101_v43, 0  ;;  %s2228_s30 = sshll.u32 %s3712_s5, 4  ;;  %s2229_s30 = int_to_ptr.vmem [resolvable:$true] %s2228_s30 }
 0x1b2   :  { %v2024_v12 = vpop.f32.mrf.mxu3 }
 0x1b3   :  { %v2025_v50 = vadd.f32 %v2024_v12, %v2011_v46 }
 0x1b4   :  { %v2012_v14 = vpop.f32.mrf.mxu2  ;;  %v2110_v62 = vpop.f32.mrf.mxu1 }
 0x1b5   :  { %v2141_v59 = vadd.f32 %v3544_v58, %v2025_v50  ;;  %v2013_v1 = vadd.f32 %v2012_v14, %v1999_v57  ;;  %v2204_v50 = vperm.slane %v101_v43, 1 }
 0x1ba   :  { %v2026_v17 = vpop.f32.mrf.mxu3 }
 0x1bb   :  { %v2027_v3 = vadd.f32 %v2026_v17, %v2013_v1 }
 0x1bc   :  { %v2066_v18 = vpop.f32.mrf.mxu2 }
 0x1bd   :  { %v2067_v30 = vadd.f32 %v2066_v18, %v2053_v26  ;;  %v2143_v9 = vadd.f32 %v3546_v8, %v2027_v3  ;;  %v2154_v18 = vmul.f32 %v3539_v15, %v2153_v16 }
 0x1bf   :  { %v2155_v14 = vadd.f32 %v3539_v15, %v2154_v18 }
 0x1c1   :  { %v2157_v19 = vsel %vm2156_vm0, %v3539_v15, %v2155_v14 }
 0x1c2   :  { %v2080_v25 = vpop.f32.mrf.mxu3 }
 0x1c3   :  { %v2081_v33 = vadd.f32 %v2080_v25, %v2067_v30 }
 0x1c4   :  { %v2068_v27 = vpop.f32.mrf.mxu2 }
 0x1c5   :  { %v2095_v40 = vadd.f32 %v2094_v34, %v2081_v33  ;;  %v2069_v44 = vadd.f32 %v2068_v27, %v2055_v39 }
 0x1c7   :  { %v2109_v13 = vadd.f32 %v2108_v56, %v2095_v40 }
 0x1ca   :  { %v2082_v37 = vpop.f32.mrf.mxu3 }
 0x1cb   :  { %v2083_v49 = vadd.f32 %v2082_v37, %v2069_v44 }
 0x1cc   :  { %v2122_v42 = vpop.f32.mrf.mxu2 }
 0x1cd   :  { %v2123_v41 = vadd.f32 %v2122_v42, %v2109_v13  ;;  %v2097_v55 = vadd.f32 %v2096_v47, %v2083_v49  ;;  %v102_v13 = vld [vmem:[#allocation10] sm:$0x3] }
 0x1cf   :  { %v2111_v54 = vadd.f32 %v2110_v62, %v2097_v55  ;;  %v2212_v55 = vperm.slane %v102_v13, 0 }
 0x1d2   :  { %v2136_v51 = vpop.f32.mrf.mxu3 }
 0x1d3   :  { %v2137_v28 = vadd.f32 %v2136_v51, %v2123_v41 }
 0x1d4   :  { %v2124_v0 = vpop.f32.mrf.mxu2 }
 0x1d5   :  { %v2142_v31 = vadd.f32 %v3545_v61, %v2137_v28  ;;  %v2125_v4 = vadd.f32 %v2124_v0, %v2111_v54  ;;  %v2213_v28 = vperm.slane %v102_v13, 1 }
 0x1d7   :  { %v2145_v2 = vadd.f32 %v2142_v31, %v2141_v59 }
 0x1d9   :  { %2146 = vadd.xlane.f32.xlu0 %v2145_v2 }
 0x1da   :  { %v2138_v6 = vpop.f32.mrf.mxu3 }
 0x1db   :  { %v2139_v7 = vadd.f32 %v2138_v6, %v2125_v4 }
 0x1dd   :  { %v2144_v60 = vadd.f32 %v3547_v10, %v2139_v7 }
 0x1df   :  { %v2148_v12 = vadd.f32 %v2144_v60, %v2143_v9 }
 0x1e1   :  { %2149 = vadd.xlane.f32.xlu0 %v2148_v12 }
 0x24c   :  { %v2147_v17 = vpop.xlane.xlu0 %2146 }
 0x24d   :  { %v2158_v20 = vmul.f32 %v2157_v19, %v2147_v17 }
 0x24f   :  { %v2160_v21 = vsub.f32 %v2141_v59, %v2158_v20  ;;  %v2161_v22 = vsub.f32 %v2142_v31, %v2158_v20 }
 0x251   :  { %v2164_v23 = vmul.f32 %v2160_v21, %v2160_v21  ;;  %v2165_v24 = vmul.f32 %v2161_v22, %v2161_v22 }
 0x253   :  { %v2168_v25 = vadd.f32 %v2165_v24, %v2164_v23 }
 0x254   :  { %v2150_v26 = vpop.xlane.xlu0 %2149 }
 0x255   :  { %v2159_v27 = vmul.f32 %v2157_v19, %v2150_v26  ;;  %2169 = vadd.xlane.f32.xlu1 %v2168_v25 }
 0x257   :  { %v2162_v29 = vsub.f32 %v2143_v9, %v2159_v27  ;;  %v2163_v30 = vsub.f32 %v2144_v60, %v2159_v27 }
 0x259   :  { %v2166_v32 = vmul.f32 %v2162_v29, %v2162_v29  ;;  %v2167_v33 = vmul.f32 %v2163_v30, %v2163_v30 }
 0x25b   :  { %v2171_v34 = vadd.f32 %v2167_v33, %v2166_v32 }
 0x25d   :  { %2172 = vadd.xlane.f32.xlu1 %v2171_v34 }
 0x2c8   :  { %v2170_v35 = vpop.xlane.xlu1 %2169 }
 0x2c9   :  { %v2174_v36 = vmul.f32 %v2170_v35, %v2157_v19 }
 0x2cb   :  { %v2176_v53 = vadd.f32 1e-05, %v2174_v36 }
 0x2cd   :  { %3540 = vrsqrt.f32 %v2176_v53  ;;  %vm2184_vm2 = vweird.f32 %v2176_v53 }
 0x2d0   :  { %v2173_v37 = vpop.xlane.xlu1 %2172 }
 0x2d1   :  { %v2175_v38 = vmul.f32 %v2173_v37, %v2157_v19 }
 0x2d3   :  { %v3541_v39 = vpop.eup %3540  ;;  %v2177_v40 = vadd.f32 1e-05, %v2175_v38 }
 0x2d4   :  { %v2179_v56 = vmul.f32 %v3541_v39, %v2176_v53  ;;  %vm2185_vm1 = vweird.f32 %v3541_v39 }
 0x2d5   :  { %3542 = vrsqrt.f32 %v2177_v40  ;;  %vm2186_vm3 = vmor %vm2184_vm2, %vm2185_vm1  ;;  %vm2194_vm5 = vweird.f32 %v2177_v40 }
 0x2d6   :  { %v2180_v42 = vmul.f32 %v3541_v39, %v2179_v56 }
 0x2d8   :  { %v2181_v63 = vmul.f32 0.5, %v2180_v42 }
 0x2da   :  { %v2182_v44 = vsub.f32 1.5, %v2181_v63 }
 0x2db   :  { %v3543_v45 = vpop.eup %3542 }
 0x2dc   :  { %v2183_v46 = vmul.f32 %v3541_v39, %v2182_v44  ;;  %v2189_v49 = vmul.f32 %v3543_v45, %v2177_v40  ;;  %vm2195_vm4 = vweird.f32 %v3543_v45 }
 0x2dd   :  { %vm2196_vm6 = vmor %vm2194_vm5, %vm2195_vm4 }
 0x2de   :  { %v2187_v41 = vsel %vm2186_vm3, %v3541_v39, %v2183_v46  ;;  %v2190_v47 = vmul.f32 %v3543_v45, %v2189_v49 }
 0x2df   :  { %v2198_v51 = vmul.f32 %v2187_v41, %v2160_v21  ;;  %v2199_v52 = vmul.f32 %v2187_v41, %v2161_v22 }
 0x2e0   :  { %v2191_v57 = vmul.f32 0.5, %v2190_v47 }
 0x2e1   :  { %v2207_v58 = vmul.f32 %v2203_v48, %v2198_v51  ;;  %v2208_v59 = vmul.f32 %v2204_v50, %v2199_v52 }
 0x2e2   :  { %v2192_v61 = vsub.f32 1.5, %v2191_v57 }
 0x2e3   :  { %v2216_v31 = vadd.f32 %v2212_v55, %v2207_v58  ;;  %v2217_v62 = vadd.f32 %v2213_v28, %v2208_v59 }
 0x2e4   :  { %v2193_v0 = vmul.f32 %v3543_v45, %v2192_v61 }
 0x2e5   :  { %2220 = vst [vmem:[#allocation11] sm:$0xff] %v2216_v31 }
 0x2e6   :  { %v2197_v1 = vsel %vm2196_vm6, %v3543_v45, %v2193_v0  ;;  %2221 = vst [vmem:[#allocation11 + $0x8] sm:$0xff] %v2217_v62 }
 0x2e7   :  { %v2200_v54 = vmul.f32 %v2197_v1, %v2162_v29  ;;  %v2201_v2 = vmul.f32 %v2197_v1, %v2163_v30 }
 0x2e9   :  { %v2209_v3 = vmul.f32 %v2203_v48, %v2200_v54  ;;  %v2210_v4 = vmul.f32 %v2204_v50, %v2201_v2 }
 0x2eb   :  { %v2218_v6 = vadd.f32 %v2212_v55, %v2209_v3  ;;  %v2219_v7 = vadd.f32 %v2213_v28, %v2210_v4 }
 0x2ed   :  { %2222 = vst [vmem:[#allocation11 + $0x10] sm:$0xff] %v2218_v6 }
 0x2ee   :  { %2223 = vst [vmem:[#allocation11 + $0x18] sm:$0xff] %v2219_v7 }
 0x2ef   :  { %2236 = dma.vmem_to_hbm [thread:$0]  %s2229_s30, 512, %s2231_s10, [#allocation4], %s3707_s21, %s3707_s21, %s3708_s22  }
 0x2f0   :  { %3698 = dma.done.wait [#allocation4], 512  }
 0x2f1   :  { %3699 = vsyncadd [#allocation4], 4294966784 }
 0x2f2   :  { %2241 = vsyncpa [#allocation3], 1 }
 0x2f3   :  { %2242 = vsyncpa [#allocation6], 1 }
 0x2f4   :  { %2243 = vsyncpa [#allocation9], 1 }
 0x2f5   :  { %2244 = vsyncpa [#allocation4], 1 }

</bundles_post_ra>
